<compile_context>
chip_gen: v7x
topology: tpu7x:2x2x1
jax: 0.10.0
libtpu: 0.0.40
codegen_flags: <defaults>
</compile_context>

<pallas_src>
import functools
import math

import jax
import jax.numpy as jnp
from jax.experimental import pallas as pl
from jax.experimental.pallas import tpu as pltpu


def _cdiv(a, b):
    return -(-a // b)


def _silu(x):
    # x * sigmoid(x); exp and approximate reciprocal both issue on the EUP slot.
    return x * pl.reciprocal(1.0 + jnp.exp(-x), approx=True)


def _output_block_kernel(
    h_ref,       # [tile_n, H]   bf16
    z_ref,       # [tile_n, 1]   f32
    batch_ref,   # [1, tile_n]   int32  (graph id per node)
    w1t_ref,     # [H, H2]       bf16   lin1.weight.T
    b1_ref,      # [1, H2]       f32
    wz1_ref,     # [1, 16]       f32    z_emb[0].weight.T (in_features == 1)
    bz1_ref,     # [1, 16]       f32
    wz2t_ref,    # [16, Z]       bf16   z_emb[2].weight.T
    bz2_ref,     # [1, Z]        f32
    w2h_ref,     # [H2, 1]       bf16   lin2.weight.T (first H2 rows)
    w2z_ref,     # [Z, 1]        bf16   lin2.weight.T (last Z rows)
    out_ref,     # [1, B, 1]     f32    per-core partial pooled result
    acc_ref,     # scratch [B,1] f32
    *,
    tiles_per_core,
    tile_n,
    n_nodes,
):
    core = pl.program_id(0)
    step = pl.program_id(1)

    @pl.when(step == 0)
    def _():
        acc_ref[...] = jnp.zeros_like(acc_ref)

    # --- lin1 + SiLU (bf16 MXU operands, f32 accumulate) --------------------
    h1 = jnp.dot(h_ref[...], w1t_ref[...], preferred_element_type=jnp.float32)
    h1 = _silu(h1 + b1_ref[...])                                   # [tile_n, H2]

    # --- z embedding MLP: Linear(1,16) -> SiLU -> Linear(16,Z) -> SiLU ------
    # z @ Wz1.T with K == 1 is an outer-product broadcast (VPU, f32).
    z16 = _silu(z_ref[...] * wz1_ref[...] + bz1_ref[...])          # [tile_n, 16]
    zemb = jnp.dot(z16.astype(jnp.bfloat16), wz2t_ref[...],
                   preferred_element_type=jnp.float32)
    zemb = _silu(zemb + bz2_ref[...])                              # [tile_n, Z]

    # --- lin2 (no bias) fused per node, before pooling -----------------------
    s = (jnp.dot(h1.astype(jnp.bfloat16), w2h_ref[...],
                 preferred_element_type=jnp.float32)
         + jnp.dot(zemb.astype(jnp.bfloat16), w2z_ref[...],
                   preferred_element_type=jnp.float32))            # [tile_n, 1]

    # --- ragged-tail mask: zero rows whose global node id >= n_nodes --------
    # (also zeros fully out-of-range tiles created by the core split, and any
    #  garbage / NaN that could come from the unpadded last HBM block).
    tile_idx = core * tiles_per_core + step
    row_iota = jax.lax.broadcasted_iota(jnp.int32, (tile_n, 1), 0)
    valid = (tile_idx * tile_n + row_iota) < n_nodes
    s = jnp.where(valid, s, 0.0)

    # --- per-tile one-hot scatter-add pooling (bf16 MXU, f32 accumulate) ----
    n_graphs = acc_ref.shape[0]
    graph_iota = jax.lax.broadcasted_iota(jnp.int32, (n_graphs, tile_n), 0)
    one_hot = (graph_iota == batch_ref[...]).astype(jnp.bfloat16)  # [B, tile_n]
    acc_ref[...] += jnp.dot(one_hot, s.astype(jnp.bfloat16),
                            preferred_element_type=jnp.float32)

    @pl.when(step == tiles_per_core - 1)
    def _():
        out_ref[0] = acc_ref[...]


@functools.partial(jax.jit, static_argnames=("num_graphs", "tile_n", "num_cores"))
def output_block_with_z(h, z_coords, batch, params, *, num_graphs,
                        tile_n=2048, num_cores=2):
    """Pallas forward of OutputBlockWithZ (eval mode, dropout disabled)."""
    assert tile_n % 128 == 0, "tile_n must be a multiple of 128"
    n, hidden = h.shape
    h2_dim = params["w1"].shape[0]
    z_dim = params["wz2"].shape[0]

    # No extra HBM passes over the big streams: h goes straight in as bf16
    # (no-op if the producer already emits bf16), z stays f32, batch is only
    # reshaped. The ragged node tail is handled inside the kernel.
    h_in = h.astype(jnp.bfloat16)
    z_in = z_coords.astype(jnp.float32)
    batch_in = batch.astype(jnp.int32).reshape(1, n)

    num_tiles = _cdiv(n, tile_n)
    num_cores = max(1, min(num_cores, num_tiles))
    tiles_per_core = _cdiv(num_tiles, num_cores)
    last_blk = num_tiles - 1

    def _node_map(c, i):
        # Clamp so fully out-of-range tiles re-read the last valid block; the
        # in-kernel mask zeroes their contribution.
        return (jnp.minimum(c * tiles_per_core + i, last_blk), 0)

    def _batch_map(c, i):
        return (0, jnp.minimum(c * tiles_per_core + i, last_blk))

    def _full(shape):
        # Whole-array block, constant index -> stays resident in VMEM.
        return pl.BlockSpec(shape, lambda c, i, _s=shape: (0,) * len(_s))

    w1, b1 = params["w1"], params["b1"]
    wz1, bz1 = params["wz1"], params["bz1"]
    wz2, bz2 = params["wz2"], params["bz2"]
    w2, b2 = params["w2"], params["b2"]

    inputs = (
        h_in,
        z_in,
        batch_in,
        w1.T.astype(jnp.bfloat16),                            # [H, H2]
        b1.reshape(1, -1).astype(jnp.float32),                # [1, H2]
        wz1.T.astype(jnp.float32),                            # [1, 16]
        bz1.reshape(1, -1).astype(jnp.float32),               # [1, 16]
        wz2.T.astype(jnp.bfloat16),                           # [16, Z]
        bz2.reshape(1, -1).astype(jnp.float32),               # [1, Z]
        w2[:, :h2_dim].T.astype(jnp.bfloat16),                # [H2, 1]
        w2[:, h2_dim:h2_dim + z_dim].T.astype(jnp.bfloat16),  # [Z, 1]
    )

    kernel = functools.partial(
        _output_block_kernel,
        tiles_per_core=tiles_per_core, tile_n=tile_n, n_nodes=n)

    grid_spec = pltpu.PrefetchScalarGridSpec(
        num_scalar_prefetch=0,
        grid=(num_cores, tiles_per_core),
        in_specs=[
            pl.BlockSpec((tile_n, hidden), _node_map),   # h tile (bf16)
            pl.BlockSpec((tile_n, 1), _node_map),        # z tile (f32)
            pl.BlockSpec((1, tile_n), _batch_map),       # batch-id tile
            _full((hidden, h2_dim)),
            _full((1, h2_dim)),
            _full((1, 16)),
            _full((1, 16)),
            _full((16, z_dim)),
            _full((1, z_dim)),
            _full((h2_dim, 1)),
            _full((z_dim, 1)),
        ],
        out_specs=pl.BlockSpec((1, num_graphs, 1), lambda c, i: (c, 0, 0)),
        scratch_shapes=[pltpu.VMEM((num_graphs, 1), jnp.float32)],
    )

    # Explicit scoped-VMEM limit derived from the (double-buffered) tile size,
    # with generous headroom for weights/scratch; capped for the v7x 64 MiB TC.
    tile_bytes = tile_n * (hidden * 2 + 4 + 4)   # h bf16 + z f32 + batch i32
    vmem_limit = int(min(max(4 * tile_bytes + (8 << 20), 32 << 20), 64 << 20))

    partials = pl.pallas_call(
        kernel,
        out_shape=jax.ShapeDtypeStruct((num_cores, num_graphs, 1), jnp.float32),
        grid_spec=grid_spec,
        compiler_params=pltpu.CompilerParams(
            dimension_semantics=("parallel", "arbitrary"),
            vmem_limit_bytes=vmem_limit,
        ),
    )(*inputs)

    # Sum per-core partials and add the lin2 bias once per graph (tiny XLA op).
    return partials.sum(axis=0) + b2.reshape(1, 1).astype(jnp.float32)


def _xavier_uniform(key, out_f, in_f):
    limit = math.sqrt(6.0 / (in_f + out_f))
    return jax.random.uniform(key, (out_f, in_f), jnp.float32, -limit, limit)


def init_params(key, hidden_channels, z_dim=32):
    h2 = hidden_channels // 2
    ks = jax.random.split(key, 4)
    return {
        "w1": _xavier_uniform(ks[0], h2, hidden_channels),
        "b1": jnp.zeros((h2,), jnp.float32),
        "wz1": _xavier_uniform(ks[1], 16, 1),
        "bz1": jnp.zeros((16,), jnp.float32),
        "wz2": _xavier_uniform(ks[2], z_dim, 16),
        "bz2": jnp.zeros((z_dim,), jnp.float32),
        "w2": _xavier_uniform(ks[3], 1, h2 + z_dim),
        "b2": jnp.zeros((1,), jnp.float32),
    }


def _reference(h, z_coords, batch, params, num_graphs):
    """Pure-JAX f32 reference matching the PyTorch forward (eval mode)."""
    silu = lambda x: x * jax.nn.sigmoid(x)
    h1 = silu(h @ params["w1"].T + params["b1"])
    z16 = silu(z_coords @ params["wz1"].T + params["bz1"])
    zemb = silu(z16 @ params["wz2"].T + params["bz2"])
    h_pooled = jax.ops.segment_sum(h1, batch, num_segments=num_graphs)
    z_pooled = jax.ops.segment_sum(zemb, batch, num_segments=num_graphs)
    combined = jnp.concatenate([h_pooled, z_pooled], axis=1)
    return combined @ params["w2"].T + params["b2"]


if __name__ == "__main__":
    hidden_channels = 32
    z_dim = 32
    n_nodes = 600          # not a multiple of tile_n -> exercises ragged tail
    num_graphs = 4
    tile_n = 256           # small tile so the test exercises multiple steps

    key = jax.random.PRNGKey(0)
    k_h, k_z, k_b, k_p = jax.random.split(key, 4)

    # h arrives in bf16 (matching the upstream producer); reference uses the
    # same bf16-rounded values so the comparison isolates kernel error.
    h = jax.random.normal(
        k_h, (n_nodes, hidden_channels), jnp.float32).astype(jnp.bfloat16)
    z_coords = jax.random.normal(k_z, (n_nodes, 1), jnp.float32)
    batch = jax.random.randint(k_b, (n_nodes,), 0, num_graphs, dtype=jnp.int32)
    params = init_params(k_p, hidden_channels, z_dim)

    out = output_block_with_z(h, z_coords, batch, params,
                              num_graphs=num_graphs, tile_n=tile_n,
                              num_cores=2)
    out = jax.block_until_ready(out)

    ref = _reference(h.astype(jnp.float32), z_coords, batch, params, num_graphs)
    assert out.shape == (num_graphs, 1)
    err = float(jnp.max(jnp.abs(out - ref)))
    scale = float(jnp.max(jnp.abs(ref)))
    # bf16 MXU operands (incl. bf16 s for pooling) + approx-reciprocal sigmoid
    # -> relaxed tolerance relative to the output scale.
    assert err <= 3e-2 * max(scale, 1.0), f"max abs err {err} vs ref scale {scale}"

    print("KERNEL_OK")
</pallas_src>

<mosaic_0001>
module attributes {stable_mosaic.version = 11 : i64} {
  func.func @_output_block_kernel(%arg0: i32, %arg1: i32, %arg2: memref<256x32xbf16, #tpu.memory_space<vmem>>, %arg3: memref<256x1xf32, #tpu.memory_space<vmem>>, %arg4: memref<1x256xi32, #tpu.memory_space<vmem>>, %arg5: memref<32x16xbf16, #tpu.memory_space<vmem>>, %arg6: memref<1x16xf32, #tpu.memory_space<vmem>>, %arg7: memref<1x16xf32, #tpu.memory_space<vmem>>, %arg8: memref<1x16xf32, #tpu.memory_space<vmem>>, %arg9: memref<16x32xbf16, #tpu.memory_space<vmem>>, %arg10: memref<1x32xf32, #tpu.memory_space<vmem>>, %arg11: memref<16x1xbf16, #tpu.memory_space<vmem>>, %arg12: memref<32x1xbf16, #tpu.memory_space<vmem>>, %arg13: memref<1x4x1xf32, #tpu.memory_space<vmem>>, %arg14: memref<4x1xf32, #tpu.memory_space<vmem>>) attributes {dimension_semantics = [#tpu.dimension_semantics<parallel>, #tpu.dimension_semantics<arbitrary>], iteration_bounds = array<i64: 2, 2>, scalar_prefetch = 0 : i64, scratch_operands = 1 : i64, tpu.core_type = #tpu.core_type<tc>, window_params = [{transform_indices = @transform_0, window_bounds = array<i64: 256, 32>}, {transform_indices = @transform_1, window_bounds = array<i64: 256, 1>}, {transform_indices = @transform_2, window_bounds = array<i64: 1, 256>}, {pipeline_mode = #tpu.pipeline_mode<synchronous>, transform_indices = @transform_3, window_bounds = array<i64: 32, 16>}, {pipeline_mode = #tpu.pipeline_mode<synchronous>, transform_indices = @transform_4, window_bounds = array<i64: 1, 16>}, {pipeline_mode = #tpu.pipeline_mode<synchronous>, transform_indices = @transform_5, window_bounds = array<i64: 1, 16>}, {pipeline_mode = #tpu.pipeline_mode<synchronous>, transform_indices = @transform_6, window_bounds = array<i64: 1, 16>}, {pipeline_mode = #tpu.pipeline_mode<synchronous>, transform_indices = @transform_7, window_bounds = array<i64: 16, 32>}, {pipeline_mode = #tpu.pipeline_mode<synchronous>, transform_indices = @transform_8, window_bounds = array<i64: 1, 32>}, {pipeline_mode = #tpu.pipeline_mode<synchronous>, transform_indices = @transform_9, window_bounds = array<i64: 16, 1>}, {pipeline_mode = #tpu.pipeline_mode<synchronous>, transform_indices = @transform_10, window_bounds = array<i64: 32, 1>}, {transform_indices = @transform_11, window_bounds = array<i64: 1, 4, 1>}]} {
    %c0_i32 = arith.constant 0 : i32
    %0 = arith.cmpi eq, %arg1, %c0_i32 : i32
    %1 = arith.extui %0 : i1 to i32
    %c0_i32_0 = arith.constant 0 : i32
    %2 = arith.cmpi ne, %1, %c0_i32_0 : i32
    scf.if %2 {
      %cst_38 = arith.constant 0.000000e+00 : f32
      %76 = vector.broadcast %cst_38 : f32 to vector<4x1xf32>
      %c0_39 = arith.constant 0 : index
      %c0_40 = arith.constant 0 : index
      %77 = vector.load %arg14[%c0_39, %c0_40] : memref<4x1xf32, #tpu.memory_space<vmem>>, vector<4x1xf32>
      tpu.vector_store %arg14[%c0_39, %c0_40], %76 {strides = array<i32>} : memref<4x1xf32, #tpu.memory_space<vmem>>, vector<4x1xf32>,
    } else {
    }
    %c0 = arith.constant 0 : index
    %c0_1 = arith.constant 0 : index
    %3 = vector.load %arg2[%c0, %c0_1] : memref<256x32xbf16, #tpu.memory_space<vmem>>, vector<256x32xbf16>
    %c0_2 = arith.constant 0 : index
    %c0_3 = arith.constant 0 : index
    %4 = vector.load %arg5[%c0_2, %c0_3] : memref<32x16xbf16, #tpu.memory_space<vmem>>, vector<32x16xbf16>
    %cst = arith.constant dense<0.000000e+00> : vector<256x16xf32>
    %5 = tpu.matmul %3, %4, %cst {dimension_numbers = #tpu.dot_dimension_numbers<[1], [0], [0], [1], [0, 0, 1, 1], [], []>} : vector<256x32xbf16>, vector<32x16xbf16>, vector<256x16xf32> -> vector<256x16xf32>
    %c0_4 = arith.constant 0 : index
    %c0_5 = arith.constant 0 : index
    %6 = vector.load %arg6[%c0_4, %c0_5] : memref<1x16xf32, #tpu.memory_space<vmem>>, vector<1x16xf32>
    %7 = vector.broadcast %6 : vector<1x16xf32> to vector<256x16xf32>
    %8 = arith.addf %5, %7 : vector<256x16xf32>
    %cst_6 = arith.constant 0.000000e+00 : f32
    %9 = vector.broadcast %cst_6 : f32 to vector<256x16xf32>
    %10 = arith.subf %9, %8 : vector<256x16xf32>
    %11 = math.exp %10 : vector<256x16xf32>
    %cst_7 = arith.constant 1.000000e+00 : f32
    %12 = vector.broadcast %cst_7 : f32 to vector<256x16xf32>
    %13 = arith.addf %12, %11 : vector<256x16xf32>
    %14 = tpu.reciprocal %13 {approx = true} : vector<256x16xf32> -> vector<256x16xf32>
    %15 = arith.mulf %8, %14 : vector<256x16xf32>
    %c0_8 = arith.constant 0 : index
    %c0_9 = arith.constant 0 : index
    %16 = vector.load %arg3[%c0_8, %c0_9] : memref<256x1xf32, #tpu.memory_space<vmem>>, vector<256x1xf32>
    %c0_10 = arith.constant 0 : index
    %c0_11 = arith.constant 0 : index
    %17 = vector.load %arg7[%c0_10, %c0_11] : memref<1x16xf32, #tpu.memory_space<vmem>>, vector<1x16xf32>
    %18 = vector.broadcast %16 : vector<256x1xf32> to vector<256x16xf32>
    %19 = vector.broadcast %17 : vector<1x16xf32> to vector<256x16xf32>
    %20 = arith.mulf %18, %19 : vector<256x16xf32>
    %c0_12 = arith.constant 0 : index
    %c0_13 = arith.constant 0 : index
    %21 = vector.load %arg8[%c0_12, %c0_13] : memref<1x16xf32, #tpu.memory_space<vmem>>, vector<1x16xf32>
    %22 = vector.broadcast %21 : vector<1x16xf32> to vector<256x16xf32>
    %23 = arith.addf %20, %22 : vector<256x16xf32>
    %cst_14 = arith.constant 0.000000e+00 : f32
    %24 = vector.broadcast %cst_14 : f32 to vector<256x16xf32>
    %25 = arith.subf %24, %23 : vector<256x16xf32>
    %26 = math.exp %25 : vector<256x16xf32>
    %cst_15 = arith.constant 1.000000e+00 : f32
    %27 = vector.broadcast %cst_15 : f32 to vector<256x16xf32>
    %28 = arith.addf %27, %26 : vector<256x16xf32>
    %29 = tpu.reciprocal %28 {approx = true} : vector<256x16xf32> -> vector<256x16xf32>
    %30 = arith.mulf %23, %29 : vector<256x16xf32>
    %31 = arith.truncf %30 : vector<256x16xf32> to vector<256x16xbf16>
    %c0_16 = arith.constant 0 : index
    %c0_17 = arith.constant 0 : index
    %32 = vector.load %arg9[%c0_16, %c0_17] : memref<16x32xbf16, #tpu.memory_space<vmem>>, vector<16x32xbf16>
    %cst_18 = arith.constant dense<0.000000e+00> : vector<256x32xf32>
    %33 = tpu.matmul %31, %32, %cst_18 {dimension_numbers = #tpu.dot_dimension_numbers<[1], [0], [0], [1], [0, 0, 1, 1], [], []>} : vector<256x16xbf16>, vector<16x32xbf16>, vector<256x32xf32> -> vector<256x32xf32>
    %c0_19 = arith.constant 0 : index
    %c0_20 = arith.constant 0 : index
    %34 = vector.load %arg10[%c0_19, %c0_20] : memref<1x32xf32, #tpu.memory_space<vmem>>, vector<1x32xf32>
    %35 = vector.broadcast %34 : vector<1x32xf32> to vector<256x32xf32>
    %36 = arith.addf %33, %35 : vector<256x32xf32>
    %cst_21 = arith.constant 0.000000e+00 : f32
    %37 = vector.broadcast %cst_21 : f32 to vector<256x32xf32>
    %38 = arith.subf %37, %36 : vector<256x32xf32>
    %39 = math.exp %38 : vector<256x32xf32>
    %cst_22 = arith.constant 1.000000e+00 : f32
    %40 = vector.broadcast %cst_22 : f32 to vector<256x32xf32>
    %41 = arith.addf %40, %39 : vector<256x32xf32>
    %42 = tpu.reciprocal %41 {approx = true} : vector<256x32xf32> -> vector<256x32xf32>
    %43 = arith.mulf %36, %42 : vector<256x32xf32>
    %44 = arith.truncf %15 : vector<256x16xf32> to vector<256x16xbf16>
    %c0_23 = arith.constant 0 : index
    %c0_24 = arith.constant 0 : index
    %45 = vector.load %arg11[%c0_23, %c0_24] : memref<16x1xbf16, #tpu.memory_space<vmem>>, vector<16x1xbf16>
    %cst_25 = arith.constant dense<0.000000e+00> : vector<256x1xf32>
    %46 = tpu.matmul %44, %45, %cst_25 {dimension_numbers = #tpu.dot_dimension_numbers<[1], [0], [0], [1], [0, 0, 1, 1], [], []>} : vector<256x16xbf16>, vector<16x1xbf16>, vector<256x1xf32> -> vector<256x1xf32>
    %47 = arith.truncf %43 : vector<256x32xf32> to vector<256x32xbf16>
    %c0_26 = arith.constant 0 : index
    %c0_27 = arith.constant 0 : index
    %48 = vector.load %arg12[%c0_26, %c0_27] : memref<32x1xbf16, #tpu.memory_space<vmem>>, vector<32x1xbf16>
    %cst_28 = arith.constant dense<0.000000e+00> : vector<256x1xf32>
    %49 = tpu.matmul %47, %48, %cst_28 {dimension_numbers = #tpu.dot_dimension_numbers<[1], [0], [0], [1], [0, 0, 1, 1], [], []>} : vector<256x32xbf16>, vector<32x1xbf16>, vector<256x1xf32> -> vector<256x1xf32>
    %50 = arith.addf %46, %49 : vector<256x1xf32>
    %c2_i32 = arith.constant 2 : i32
    %51 = arith.muli %arg0, %c2_i32 : i32
    %52 = arith.addi %51, %arg1 : i32
    %53 = tpu.iota {dimensions = array<i32: 0>} : vector<256x1xi32>
    %c256_i32 = arith.constant 256 : i32
    %54 = arith.muli %52, %c256_i32 : i32
    %55 = vector.broadcast %54 : i32 to vector<256x1xi32>
    %56 = arith.addi %55, %53 : vector<256x1xi32>
    %c600_i32 = arith.constant 600 : i32
    %57 = vector.broadcast %c600_i32 : i32 to vector<256x1xi32>
    %58 = arith.cmpi slt, %56, %57 : vector<256x1xi32>
    %cst_29 = arith.constant 0.000000e+00 : f32
    %59 = vector.broadcast %cst_29 : f32 to vector<256x1xf32>
    %60 = arith.select %58, %50, %59 : vector<256x1xi1>, vector<256x1xf32>
    %61 = tpu.iota {dimensions = array<i32: 0>} : vector<4x256xi32>
    %c0_30 = arith.constant 0 : index
    %c0_31 = arith.constant 0 : index
    %62 = vector.load %arg4[%c0_30, %c0_31] : memref<1x256xi32, #tpu.memory_space<vmem>>, vector<1x256xi32>
    %63 = vector.broadcast %62 : vector<1x256xi32> to vector<4x256xi32>
    %64 = arith.cmpi eq, %61, %63 : vector<4x256xi32>
    %65 = arith.extui %64 : vector<4x256xi1> to vector<4x256xi32>
    %66 = arith.sitofp %65 : vector<4x256xi32> to vector<4x256xf32>
    %67 = arith.truncf %66 : vector<4x256xf32> to vector<4x256xbf16>
    %c0_32 = arith.constant 0 : index
    %c0_33 = arith.constant 0 : index
    %68 = vector.load %arg14[%c0_32, %c0_33] : memref<4x1xf32, #tpu.memory_space<vmem>>, vector<4x1xf32>
    %69 = arith.truncf %60 : vector<256x1xf32> to vector<256x1xbf16>
    %cst_34 = arith.constant dense<0.000000e+00> : vector<4x1xf32>
    %70 = tpu.matmul %67, %69, %cst_34 {dimension_numbers = #tpu.dot_dimension_numbers<[1], [0], [0], [1], [0, 0, 1, 1], [], []>} : vector<4x256xbf16>, vector<256x1xbf16>, vector<4x1xf32> -> vector<4x1xf32>
    %71 = arith.addf %68, %70 : vector<4x1xf32>
    %c0_35 = arith.constant 0 : index
    %c0_36 = arith.constant 0 : index
    %72 = vector.load %arg14[%c0_35, %c0_36] : memref<4x1xf32, #tpu.memory_space<vmem>>, vector<4x1xf32>
    tpu.vector_store %arg14[%c0_35, %c0_36], %71 {strides = array<i32>} : memref<4x1xf32, #tpu.memory_space<vmem>>, vector<4x1xf32>,
    %c1_i32 = arith.constant 1 : i32
    %73 = arith.cmpi eq, %arg1, %c1_i32 : i32
    %74 = arith.extui %73 : i1 to i32
    %c0_i32_37 = arith.constant 0 : i32
    %75 = arith.cmpi ne, %74, %c0_i32_37 : i32
    scf.if %75 {
      %c0_38 = arith.constant 0 : index
      %c0_39 = arith.constant 0 : index
      %76 = vector.load %arg14[%c0_38, %c0_39] : memref<4x1xf32, #tpu.memory_space<vmem>>, vector<4x1xf32>
      %c0_40 = arith.constant 0 : index
      %c0_41 = arith.constant 0 : index
      %c0_42 = arith.constant 0 : index
      %77 = vector.load %arg13[%c0_40, %c0_41, %c0_42] : memref<1x4x1xf32, #tpu.memory_space<vmem>>, vector<1x4x1xf32>
      %78 = vector.shape_cast %77 : vector<1x4x1xf32> to vector<4x1xf32>
      %79 = vector.shape_cast %76 : vector<4x1xf32> to vector<1x4x1xf32>
      tpu.vector_store %arg13[%c0_40, %c0_41, %c0_42], %79 {strides = array<i32>} : memref<1x4x1xf32, #tpu.memory_space<vmem>>, vector<1x4x1xf32>,
    } else {
    }
    return
  }
  func.func @transform_0(%arg0: i32, %arg1: i32) -> (i32, i32) {
    %c2_i32 = arith.constant 2 : i32
    %0 = arith.muli %arg0, %c2_i32 : i32
    %1 = arith.addi %0, %arg1 : i32
    %c2_i32_0 = arith.constant 2 : i32
    %2 = arith.minsi %1, %c2_i32_0 : i32
    %c0_i32 = arith.constant 0 : i32
    %c0_i32_1 = arith.constant 0 : i32
    return %2, %c0_i32 : i32, i32
  }
  func.func @transform_1(%arg0: i32, %arg1: i32) -> (i32, i32) {
    %c2_i32 = arith.constant 2 : i32
    %0 = arith.muli %arg0, %c2_i32 : i32
    %1 = arith.addi %0, %arg1 : i32
    %c2_i32_0 = arith.constant 2 : i32
    %2 = arith.minsi %1, %c2_i32_0 : i32
    %c0_i32 = arith.constant 0 : i32
    %c0_i32_1 = arith.constant 0 : i32
    return %2, %c0_i32 : i32, i32
  }
  func.func @transform_2(%arg0: i32, %arg1: i32) -> (i32, i32) {
    %c2_i32 = arith.constant 2 : i32
    %0 = arith.muli %arg0, %c2_i32 : i32
    %1 = arith.addi %0, %arg1 : i32
    %c2_i32_0 = arith.constant 2 : i32
    %2 = arith.minsi %1, %c2_i32_0 : i32
    %c0_i32 = arith.constant 0 : i32
    %c0_i32_1 = arith.constant 0 : i32
    return %c0_i32, %2 : i32, i32
  }
  func.func @transform_3(%arg0: i32, %arg1: i32) -> (i32, i32) {
    %c0_i32 = arith.constant 0 : i32
    %c0_i32_0 = arith.constant 0 : i32
    %c0_i32_1 = arith.constant 0 : i32
    return %c0_i32, %c0_i32_0 : i32, i32
  }
  func.func @transform_4(%arg0: i32, %arg1: i32) -> (i32, i32) {
    %c0_i32 = arith.constant 0 : i32
    %c0_i32_0 = arith.constant 0 : i32
    %c0_i32_1 = arith.constant 0 : i32
    return %c0_i32, %c0_i32_0 : i32, i32
  }
  func.func @transform_5(%arg0: i32, %arg1: i32) -> (i32, i32) {
    %c0_i32 = arith.constant 0 : i32
    %c0_i32_0 = arith.constant 0 : i32
    %c0_i32_1 = arith.constant 0 : i32
    return %c0_i32, %c0_i32_0 : i32, i32
  }
  func.func @transform_6(%arg0: i32, %arg1: i32) -> (i32, i32) {
    %c0_i32 = arith.constant 0 : i32
    %c0_i32_0 = arith.constant 0 : i32
    %c0_i32_1 = arith.constant 0 : i32
    return %c0_i32, %c0_i32_0 : i32, i32
  }
  func.func @transform_7(%arg0: i32, %arg1: i32) -> (i32, i32) {
    %c0_i32 = arith.constant 0 : i32
    %c0_i32_0 = arith.constant 0 : i32
    %c0_i32_1 = arith.constant 0 : i32
    return %c0_i32, %c0_i32_0 : i32, i32
  }
  func.func @transform_8(%arg0: i32, %arg1: i32) -> (i32, i32) {
    %c0_i32 = arith.constant 0 : i32
    %c0_i32_0 = arith.constant 0 : i32
    %c0_i32_1 = arith.constant 0 : i32
    return %c0_i32, %c0_i32_0 : i32, i32
  }
  func.func @transform_9(%arg0: i32, %arg1: i32) -> (i32, i32) {
    %c0_i32 = arith.constant 0 : i32
    %c0_i32_0 = arith.constant 0 : i32
    %c0_i32_1 = arith.constant 0 : i32
    return %c0_i32, %c0_i32_0 : i32, i32
  }
  func.func @transform_10(%arg0: i32, %arg1: i32) -> (i32, i32) {
    %c0_i32 = arith.constant 0 : i32
    %c0_i32_0 = arith.constant 0 : i32
    %c0_i32_1 = arith.constant 0 : i32
    return %c0_i32, %c0_i32_0 : i32, i32
  }
  func.func @transform_11(%arg0: i32, %arg1: i32) -> (i32, i32, i32) {
    %c0_i32 = arith.constant 0 : i32
    %c0_i32_0 = arith.constant 0 : i32
    %c0_i32_1 = arith.constant 0 : i32
    return %arg0, %c0_i32, %c0_i32_0 : i32, i32, i32
  }
}

</mosaic_0001>

<bundles_post_ra>
// kernel: output_block_with_z.1
= control target key start
LH: loop header
LB: loop body
LE: loop exit
PB: predicated region body
PF: predicated region fallthrough
CT: control target
= control target key end

     0   :  { %s3788_s17 = smov 0   ;;  %s3790_s18 = smov 0   ;;  %s4855_s0 = inlined_call_operand.vmem [shape: bf16[600,32], index: 0, kind: input, shape index: {}]   ;;  %s4856_s1 = inlined_call_operand.vmem [shape: f32[600,1], index: 1, kind: input, shape index: {}]   ;;  %s4857_s2 = inlined_call_operand.vmem [shape: s32[1,600], index: 2, kind: input, shape index: {}]   ;;  %s4858_s3 = inlined_call_operand.vmem [shape: bf16[32,16], index: 3, kind: input, shape index: {}]   ;;  %s4859_s4 = inlined_call_operand.vmem [shape: f32[1,16], index: 4, kind: input, shape index: {}]   ;;  %s4860_s5 = inlined_call_operand.vmem [shape: f32[1,16], index: 5, kind: input, shape index: {}]   ;;  %s4861_s6 = inlined_call_operand.vmem [shape: f32[1,16], index: 6, kind: input, shape index: {}]   ;;  %s4862_s7 = inlined_call_operand.vmem [shape: bf16[16,32], index: 7, kind: input, shape index: {}]   ;;  %s4863_s8 = inlined_call_operand.vmem [shape: f32[1,32], index: 8, kind: input, shape index: {}]   ;;  %s4864_s9 = inlined_call_operand.vmem [shape: bf16[16,1], index: 9, kind: input, shape index: {}]   ;;  %s4865_s10 = inlined_call_operand.vmem [shape: bf16[32,1], index: 10, kind: input, shape index: {}]   ;;  %s4866_s11 = inlined_call_operand.vmem [shape: f32[2,4,1], index: 11, kind: output, shape index: {}]  }
   0x1   :  { %s3792_s19 = smov 0   ;;  %s3794_s20 = smov 0  }
   0x2   :  { %s3796_s21 = smov 0  }
   0x3 LB: > { %4874 = sst [smem:[#allocation3_spill]] %s3719_s20  ;;  %s30_s22 = sadd.s32 1, %s3715_s19  ;;  %s3723_s21 = sphi %s3796_s21, %s21_s21   ;;  %s3719_s20 = sphi %s3794_s20, %s4911_s20   ;;  %s3715_s19 = sphi %s3792_s19, %s4913_s19   ;;  %s3711_s18 = sphi %s3790_s18, %s4909_s18   ;;  %s3707_s17 = sphi %s3788_s17, %s4912_s17  }
   0x4   : > { %s33_s23 = sadd.s32 1, %s3719_s20  ;;  %p31_p0 = scmp.ge.s32.totalorder %s30_s22, 2 }
   0x5   : > { %p2808_p1 = scmp.ge.s32.totalorder %s3723_s21, 1  ;;  %p443_p2 = scmp.lt.s32.totalorder %s3723_s21, 5 }
   0x6   : > { %s4915_s22 = smov (%p31_p0, %s30_s22), 0  ;;  %s4917_s23 = smov (!%p31_p0, %s33_s23), %s3719_s20 }
   0x7   : > { %4875 = sst [smem:[#allocation4_spill]] %s4915_s22  ;;  %p444_p3 = pnand %p2808_p1, %p443_p2 }
   0x8   : > { %p35_p4 = scmp.ge.s32.totalorder %s4917_s23, 2 }
   0x9   : > { %447 = sbr.rel (%p444_p3) target bundleno = 1028 (0x404), region = 64 }
   0xa   : > { %s4919_s23 = smov (%p35_p4, %s4917_s23), 0 }
   0xb   : > { %4876 = sst [smem:[#allocation5_spill]] %s4919_s23 }
  0x10   : > { %s2809_s24 = sshll.u32 %s3711_s18, 1  ;;  %p580_p5 = scmp.lt.s32.totalorder %s3711_s18, 1 }
  0x11   : > { %s3821_s25 = sadd.s32 %s3707_s17, %s2809_s24  ;;  %p2818_p9 = scmp.ne.s32.totalorder %s3707_s17, 0 }
  0x12   : > { %p517_p6 = scmp.lt.s32.totalorder %s3821_s25, 2  ;;  %s4921_s18 = smov (!%p580_p5, %s3711_s18), 1  ;;  %vm589_vm0 = vcmask (!%p2818_p9), 3072   ;;  %v3725_v0 = vmov (!%p2818_p9), 0.0  }
  0x13   : > { %s2817_s27 = sshll.u32 %s4921_s18, 2  ;;  %590 = vst.msk [vmem:[#allocation2] sm:$0xf] (!%p2818_p9), %vm589_vm0, %v3725_v0 }
  0x14   : > { %s518_s26 = scalar_select %p517_p6, %s3821_s25, 2 }
  0x15   : > { %s3828_s13 = scalar_lea.vmem %s4866_s11, %s2817_s27 }
  0x16   : > { %s2810_s28 = sshll.u32 %s518_s26, 5  ;;  %s2816_s29 = sshll.u32 %s518_s26, 1 }
  0x17   : > { %p524_p7 = scmp.lt.s32.totalorder %s2810_s28, 74  ;;  %p568_p8 = scmp.lt.s32.totalorder %s2816_s29, 4 }
  0x18   : > { %588 = sbr.rel (%p2818_p9) target bundleno = 31 (0x1f), region = 68 }
  0x19   : > { %s4923_s28 = smov (!%p524_p7, %s2810_s28), 74  ;;  %s4925_s29 = smov (!%p568_p8, %s2816_s29), 4 }
  0x1a   : > { %s2811_s14 = sshll.u32 %s4923_s28, 2  ;;  %s2814_s15 = sshll.u32 %s4923_s28, 3 }
  0x1b   : > { %s3835_s23 = scalar_lea.vmem %s4855_s0, %s2811_s14  ;;  %s3840_s22 = scalar_lea.vmem %s4856_s1, %s2814_s15 }
  0x1c   : > { %s570_s27 = scalar_lea.vmem %s4857_s2, %s4925_s29 }
  0x1f PF: > { %v1130_v1 = vld [vmem:[%s3840_s22 + $0x10] sm:$0xff]  ;;  %v1128_v2 = vld [vmem:[%s3840_s22] sm:$0xff]  ;;  %v3726_v3 = vmov 0   ;;  %v1131_v4 = vld [vmem:[%s3840_s22 + $0x18] sm:$0xff]  ;;  %vm726_vm1 = vcmask 261120   ;;  %vm1621_vm2 = vcmask 130048  }
  0x20   : > { %3278 = vset.pattern.permute.xlu1 %v3726_v3  ;;  %3277 = vset.pattern.permute.xlu0 %v3726_v3  ;;  %v1129_v5 = vld [vmem:[%s3840_s22 + $0x8] sm:$0xff]  ;;  %v1132_v7 = vld [vmem:[%s3840_s22 + $0x20] sm:$0xff]  ;;  %v1135_v8 = vld [vmem:[%s3840_s22 + $0x38] sm:$0xff]  ;;  %s2910_s29 = sshll.u32 %s3821_s25, 8  ;;  %p2965_p10 = scmp.ne.s32.totalorder %s3707_s17, 1 }
  0x21   : > { %1173 = vperm.xlu1 %3278, %v1130_v1   ;;  %1163 = vperm.xlu0 %3277, %v1128_v2   ;;  %v1133_v6 = vld [vmem:[%s3840_s22 + $0x28] sm:$0xff]  ;;  %v1134_v9 = vld [vmem:[%s3840_s22 + $0x30] sm:$0xff]  ;;  %v3279_v10 = vld [vmem:[%s4858_s3] sm:$0xff]  }
  0x22   : > { %v3280_v11 = vld [vmem:[%s4858_s3 + $0x8] sm:$0xff]   ;;  %3060 = vmatprep.subr.bf16.mxu0 %v3279_v10  ;;  %v3281_v12 = vld [vmem:[%s3835_s23] sm:$0xff]   ;;  %v1139_v15 = vld [vmem:[%s3840_s22 + $0x58] sm:$0xff] }
  0x23   : > { %v1137_v13 = vld [vmem:[%s3840_s22 + $0x48] sm:$0xff]  ;;  %v1136_v14 = vld [vmem:[%s3840_s22 + $0x40] sm:$0xff]  ;;  %3061 = vmatpush3.bf16.msra.mxu0 %v3279_v10  ;;  %3064 = vmatprep.mubr.msk.bf16.mxu0 %vm726_vm1, %v3281_v12  ;;  %v1138_v16 = vld [vmem:[%s3840_s22 + $0x50] sm:$0xff] }
  0x24   : > { %3062 = vmatprep.subr.bf16.mxu0 %v3280_v11  ;;  %v3282_v17 = vld [vmem:[%s3835_s23 + $0x8] sm:$0xff]   ;;  %v3283_v18 = vld [vmem:[%s3835_s23 + $0x10] sm:$0xff]   ;;  %v1140_v20 = vld [vmem:[%s3840_s22 + $0x60] sm:$0xff] }
  0x25   : > { %1178 = vperm.xlu1 %3278, %v1131_v4   ;;  %1168 = vperm.xlu0 %3277, %v1129_v5   ;;  %v1141_v19 = vld [vmem:[%s3840_s22 + $0x68] sm:$0xff]  ;;  %v1143_v21 = vld [vmem:[%s3840_s22 + $0x78] sm:$0xff]  ;;  %v1142_v22 = vld [vmem:[%s3840_s22 + $0x70] sm:$0xff] }
  0x26   : > { %v3284_v23 = vld [vmem:[%s3835_s23 + $0x18] sm:$0xff]   ;;  %v3285_v24 = vld [vmem:[%s3835_s23 + $0x20] sm:$0xff]   ;;  %v1145_v25 = vld [vmem:[%s3840_s22 + $0x88] sm:$0xff] }
  0x27   : > { %3063 = vmatpush3.bf16.msra.mxu0 %v3280_v11  ;;  %v1144_v26 = vld [vmem:[%s3840_s22 + $0x80] sm:$0xff]  ;;  %v1147_v27 = vld [vmem:[%s3840_s22 + $0x98] sm:$0xff]  ;;  %v1146_v28 = vld [vmem:[%s3840_s22 + $0x90] sm:$0xff] }
  0x28   : > { %v3286_v29 = vld [vmem:[%s3835_s23 + $0x28] sm:$0xff]   ;;  %v3296_v30 = vld [vmem:[%s4862_s7] sm:$0xff]   ;;  %v3287_v31 = vld [vmem:[%s3835_s23 + $0x30] sm:$0xff]  }
  0x29   : > { %1188 = vperm.xlu1 %3278, %v1133_v6   ;;  %1183 = vperm.xlu0 %3277, %v1132_v7   ;;  %v1149_v32 = vld [vmem:[%s3840_s22 + $0xa8] sm:$0xff]  ;;  %v1148_v33 = vld [vmem:[%s3840_s22 + $0xa0] sm:$0xff]  ;;  %v1151_v34 = vld [vmem:[%s3840_s22 + $0xb8] sm:$0xff] }
  0x2a   : > { %3065 = vmatmul.mubr.msk.bf16.vlgmr.msra.gmra.mrb[0].mxu0 %vm726_vm1, %v3282_v17  ;;  %3096 = vmatprep.subr.bf16.mxu0 %v3296_v30  ;;  %v1150_v35 = vld [vmem:[%s3840_s22 + $0xb0] sm:$0xff]  ;;  %v3288_v36 = vld [vmem:[%s3835_s23 + $0x38] sm:$0xff]   ;;  %v3289_v37 = vld [vmem:[%s3835_s23 + $0x40] sm:$0xff]  }
  0x2b   : > { %3068 = vmatprep.mubr.msk.bf16.mxu0 %vm726_vm1, %v3283_v18  ;;  %3200 = vmatprep.subr.bf16.mxu1 %v3296_v30  ;;  %v1153_v38 = vld [vmem:[%s3840_s22 + $0xc8] sm:$0xff]  ;;  %v1152_v39 = vld [vmem:[%s3840_s22 + $0xc0] sm:$0xff]  ;;  %v1155_v40 = vld [vmem:[%s3840_s22 + $0xd8] sm:$0xff] }
  0x2c   : > { %3201 = vmatpush3.bf16.msra.mxu1 %v3296_v30  ;;  %3097 = vmatpush3.bf16.msra.mxu0 %v3296_v30  ;;  %v1154_v41 = vld [vmem:[%s3840_s22 + $0xd0] sm:$0xff]  ;;  %v3290_v42 = vld [vmem:[%s3835_s23 + $0x48] sm:$0xff]   ;;  %v1156_v45 = vld [vmem:[%s3840_s22 + $0xe0] sm:$0xff] }
  0x2d   : > { %1198 = vperm.xlu1 %3278, %v1135_v8   ;;  %1193 = vperm.xlu0 %3277, %v1134_v9   ;;  %v3291_v43 = vld [vmem:[%s3835_s23 + $0x50] sm:$0xff]   ;;  %v1157_v44 = vld [vmem:[%s3840_s22 + $0xe8] sm:$0xff]  ;;  %v1159_v46 = vld [vmem:[%s3840_s22 + $0xf8] sm:$0xff] }
  0x2e   : > { %v1158_v47 = vld [vmem:[%s3840_s22 + $0xf0] sm:$0xff]  ;;  %v3292_v48 = vld [vmem:[%s3835_s23 + $0x58] sm:$0xff]   ;;  %v3293_v49 = vld [vmem:[%s3835_s23 + $0x60] sm:$0xff]  }
  0x2f   : > { %v3294_v50 = vld [vmem:[%s3835_s23 + $0x68] sm:$0xff]   ;;  %v3295_v51 = vld [vmem:[%s3835_s23 + $0x70] sm:$0xff]   ;;  %v3297_v52 = vld [vmem:[%s3835_s23 + $0x78] sm:$0xff]  }
  0x30   : > { %v3923_v53 = vld [vmem:[%s4860_s5] ss:$0 sm:$0xff] }
  0x31   : > { %1208 = vperm.xlu1 %3278, %v1137_v13   ;;  %1203 = vperm.xlu0 %3277, %v1136_v14   ;;  %v3928_v54 = vld [vmem:[%s4861_s6] ss:$0 sm:$0xff] }
  0x32   : > { %3069 = vmatmul.mubr.msk.bf16.gmra.mrb[4].mxu0 %vm726_vm1, %v3284_v23 }
  0x33   : > { %3072 = vmatprep.mubr.msk.bf16.mxu0 %vm726_vm1, %v3285_v24 }
  0x35   : > { %1218 = vperm.xlu1 %3278, %v1139_v15   ;;  %1213 = vperm.xlu0 %3277, %v1138_v16  }
  0x39   : > { %1228 = vperm.xlu1 %3278, %v1141_v19   ;;  %1223 = vperm.xlu0 %3277, %v1140_v20  }
  0x3a   : > { %3073 = vmatmul.mubr.msk.bf16.gmra.mrb[8].mxu0 %vm726_vm1, %v3286_v29 }
  0x3b   : > { %3076 = vmatprep.mubr.msk.bf16.mxu0 %vm726_vm1, %v3287_v31 }
  0x3d   : > { %1238 = vperm.xlu1 %3278, %v1143_v21   ;;  %1233 = vperm.xlu0 %3277, %v1142_v22  }
  0x41   : > { %1248 = vperm.xlu1 %3278, %v1145_v25   ;;  %1243 = vperm.xlu0 %3277, %v1144_v26  }
  0x42   : > { %3077 = vmatmul.mubr.msk.bf16.gmra.mrb[12].mxu0 %vm726_vm1, %v3288_v36 }
  0x43   : > { %3080 = vmatprep.mubr.msk.bf16.mxu0 %vm726_vm1, %v3289_v37 }
  0x45   : > { %1258 = vperm.xlu1 %3278, %v1147_v27   ;;  %1253 = vperm.xlu0 %3277, %v1146_v28  }
  0x49   : > { %1268 = vperm.xlu1 %3278, %v1149_v32   ;;  %1263 = vperm.xlu0 %3277, %v1148_v33  }
  0x4a   : > { %3081 = vmatmul.mubr.msk.bf16.gmra.mrb[16].mxu0 %vm726_vm1, %v3290_v42 }
  0x4b   : > { %3084 = vmatprep.mubr.msk.bf16.mxu0 %vm726_vm1, %v3291_v43 }
  0x4d   : > { %1278 = vperm.xlu1 %3278, %v1151_v34   ;;  %1273 = vperm.xlu0 %3277, %v1150_v35  }
  0x51   : > { %1288 = vperm.xlu1 %3278, %v1153_v38   ;;  %1283 = vperm.xlu0 %3277, %v1152_v39  }
  0x52   : > { %3085 = vmatmul.mubr.msk.bf16.gmra.mrb[20].mxu0 %vm726_vm1, %v3292_v48 }
  0x53   : > { %3088 = vmatprep.mubr.msk.bf16.mxu0 %vm726_vm1, %v3293_v49 }
  0x55   : > { %1298 = vperm.xlu1 %3278, %v1155_v40   ;;  %1293 = vperm.xlu0 %3277, %v1154_v41  }
  0x59   : > { %1308 = vperm.xlu1 %3278, %v1157_v44   ;;  %1303 = vperm.xlu0 %3277, %v1156_v45  }
  0x5a   : > { %3089 = vmatmul.mubr.msk.bf16.gmra.mrb[24].mxu0 %vm726_vm1, %v3294_v50 }
  0x5b   : > { %3092 = vmatprep.mubr.msk.bf16.mxu0 %vm726_vm1, %v3295_v51 }
  0x5d   : > { %1318 = vperm.xlu1 %3278, %v1159_v46   ;;  %1313 = vperm.xlu0 %3277, %v1158_v47  }
  0x62   : > { %3093 = vmatmul.mubr.msk.bf16.gmra.mrb[28].mxu0 %vm726_vm1, %v3297_v52 }
  0xa0   : > { %v1174_v55 = vpop.permute.xlu1 %1173  ;;  %v1164_v56 = vpop.permute.xlu0 %1163 }
  0xa1   : > { %v1329_v57 = vmul.f32 %v3923_v53, %v1174_v55  ;;  %v1327_v58 = vmul.f32 %v3923_v53, %v1164_v56 }
  0xa3   : > { %v3933_v59 = vadd.f32 %v3928_v54, %v1329_v57  ;;  %v3936_v60 = vadd.f32 %v3928_v54, %v1327_v58 }
  0xa4   : > { %v1179_v61 = vpop.permute.xlu1 %1178  ;;  %v1169_v62 = vpop.permute.xlu0 %1168 }
  0xa5   : > { %v1400_v63 = vsub.f32 0.0, %v3933_v59  ;;  %v1398_v0 = vsub.f32 0.0, %v3936_v60  ;;  %v1330_v1 = vmul.f32 %v3923_v53, %v1179_v61  ;;  %v1328_v2 = vmul.f32 %v3923_v53, %v1169_v62 }
  0xa7   : > { %v1434_v3 = vmul.f32 1.442695, %v1400_v63  ;;  %v1430_v4 = vmul.f32 1.442695, %v1398_v0  ;;  %v3943_v5 = vadd.f32 %v3928_v54, %v1330_v1  ;;  %v3946_v6 = vadd.f32 %v3928_v54, %v1328_v2 }
  0xa8   : > { %v1189_v7 = vpop.permute.xlu1 %1188  ;;  %v1184_v8 = vpop.permute.xlu0 %1183 }
  0xa9   : > { %3301 = vpow2.f32 %v1434_v3  ;;  %v1401_v9 = vsub.f32 0.0, %v3943_v5  ;;  %v1399_v10 = vsub.f32 0.0, %v3946_v6  ;;  %v1332_v11 = vmul.f32 %v3923_v53, %v1189_v7 }
  0xaa   : > { %3303 = vpow2.f32 %v1430_v4  ;;  %v1331_v12 = vmul.f32 %v3923_v53, %v1184_v8 }
  0xab   : > { %v1436_v13 = vmul.f32 1.442695, %v1401_v9  ;;  %v1432_v14 = vmul.f32 1.442695, %v1399_v10  ;;  %v3953_v15 = vadd.f32 %v3928_v54, %v1332_v11 }
  0xac   : > { %v3956_v16 = vadd.f32 %v3928_v54, %v1331_v12  ;;  %v1199_v17 = vpop.permute.xlu1 %1198  ;;  %v1194_v18 = vpop.permute.xlu0 %1193 }
  0xad   : > { %3305 = vpow2.f32 %v1436_v13  ;;  %v1403_v19 = vsub.f32 0.0, %v3953_v15  ;;  %v1334_v20 = vmul.f32 %v3923_v53, %v1199_v17  ;;  %v1333_v21 = vmul.f32 %v3923_v53, %v1194_v18 }
  0xae   : > { %3307 = vpow2.f32 %v1432_v14  ;;  %v1402_v22 = vsub.f32 0.0, %v3956_v16 }
  0xaf   : > { %v1440_v23 = vmul.f32 1.442695, %v1403_v19  ;;  %v3963_v24 = vadd.f32 %v3928_v54, %v1334_v20  ;;  %v3966_v25 = vadd.f32 %v3928_v54, %v1333_v21 }
  0xb0   : > { %v1438_v26 = vmul.f32 1.442695, %v1402_v22  ;;  %v1209_v27 = vpop.permute.xlu1 %1208  ;;  %v1204_v28 = vpop.permute.xlu0 %1203 }
  0xb1   : > { %3309 = vpow2.f32 %v1440_v23  ;;  %v1405_v29 = vsub.f32 0.0, %v3963_v24  ;;  %v1404_v30 = vsub.f32 0.0, %v3966_v25  ;;  %v1336_v31 = vmul.f32 %v3923_v53, %v1209_v27 }
  0xb2   : > { %3311 = vpow2.f32 %v1438_v26  ;;  %v1335_v32 = vmul.f32 %v3923_v53, %v1204_v28 }
  0xb3   : > { %v3302_v33 = vpop.eup %3301  ;;  %v1444_v34 = vmul.f32 1.442695, %v1405_v29  ;;  %v3973_v35 = vadd.f32 %v3928_v54, %v1336_v31  ;;  %v1442_v38 = vmul.f32 1.442695, %v1404_v30 }
  0xb4   : > { %v3304_v36 = vpop.eup %3303  ;;  %v1496_v37 = vadd.f32 1.0, %v3302_v33  ;;  %v3976_v39 = vadd.f32 %v3928_v54, %v1335_v32  ;;  %v1219_v40 = vpop.permute.xlu1 %1218 }
  0xb5   : > { %v1214_v41 = vpop.permute.xlu0 %1213  ;;  %v1494_v42 = vadd.f32 1.0, %v3304_v36  ;;  %3313 = vpow2.f32 %v1444_v34  ;;  %v1407_v43 = vsub.f32 0.0, %v3973_v35  ;;  %v1338_v44 = vmul.f32 %v3923_v53, %v1219_v40 }
  0xb6   : > { %3315 = vrcp.f32 %v1496_v37  ;;  %v1406_v45 = vsub.f32 0.0, %v3976_v39  ;;  %v1337_v46 = vmul.f32 %v3923_v53, %v1214_v41 }
  0xb7   : > { %v3306_v47 = vpop.eup %3305  ;;  %3317 = vrcp.f32 %v1494_v42  ;;  %v1448_v48 = vmul.f32 1.442695, %v1407_v43  ;;  %v3983_v49 = vadd.f32 %v3928_v54, %v1338_v44 }
  0xb8   : > { %v3308_v50 = vpop.eup %3307  ;;  %v1497_v51 = vadd.f32 1.0, %v3306_v47  ;;  %3319 = vpow2.f32 %v1442_v38  ;;  %v1446_v52 = vmul.f32 1.442695, %v1406_v45  ;;  %v3986_v55 = vadd.f32 %v3928_v54, %v1337_v46  ;;  %v1229_v56 = vpop.permute.xlu1 %1228 }
  0xb9   : > { %v1224_v57 = vpop.permute.xlu0 %1223  ;;  %v1495_v58 = vadd.f32 1.0, %v3308_v50  ;;  %3321 = vpow2.f32 %v1448_v48  ;;  %v1409_v61 = vsub.f32 0.0, %v3983_v49  ;;  %v1340_v62 = vmul.f32 %v3923_v53, %v1229_v56 }
  0xba   : > { %3323 = vrcp.f32 %v1497_v51  ;;  %v1408_v63 = vsub.f32 0.0, %v3986_v55  ;;  %v1339_v0 = vmul.f32 %v3923_v53, %v1224_v57 }
  0xbb   : > { %v3310_v1 = vpop.eup %3309  ;;  %3325 = vrcp.f32 %v1495_v58  ;;  %v1452_v2 = vmul.f32 1.442695, %v1409_v61  ;;  %v3993_v3 = vadd.f32 %v3928_v54, %v1340_v62 }
  0xbc   : > { %v3312_v4 = vpop.eup %3311  ;;  %v1499_v7 = vadd.f32 1.0, %v3310_v1  ;;  %3327 = vpow2.f32 %v1446_v52  ;;  %v1450_v8 = vmul.f32 1.442695, %v1408_v63  ;;  %v3996_v9 = vadd.f32 %v3928_v54, %v1339_v0  ;;  %v1239_v10 = vpop.permute.xlu1 %1238 }
  0xbd   : > { %v1234_v11 = vpop.permute.xlu0 %1233  ;;  %v1498_v12 = vadd.f32 1.0, %v3312_v4  ;;  %3329 = vpow2.f32 %v1452_v2  ;;  %v1411_v13 = vsub.f32 0.0, %v3993_v3  ;;  %v1342_v14 = vmul.f32 %v3923_v53, %v1239_v10 }
  0xbe   : > { %3331 = vrcp.f32 %v1499_v7  ;;  %v1410_v17 = vsub.f32 0.0, %v3996_v9  ;;  %v1341_v18 = vmul.f32 %v3923_v53, %v1234_v11 }
  0xbf   : > { %v3314_v19 = vpop.eup %3313  ;;  %3333 = vrcp.f32 %v1498_v12  ;;  %v1456_v20 = vmul.f32 1.442695, %v1411_v13  ;;  %v4003_v21 = vadd.f32 %v3928_v54, %v1342_v14 }
  0xc0   : > { %v3316_v22 = vpop.eup %3315  ;;  %v1501_v23 = vadd.f32 1.0, %v3314_v19  ;;  %3335 = vpow2.f32 %v1450_v8  ;;  %v1454_v26 = vmul.f32 1.442695, %v1410_v17  ;;  %v4006_v27 = vadd.f32 %v3928_v54, %v1341_v18  ;;  %v1249_v28 = vpop.permute.xlu1 %1248 }
  0xc1   : > { %v1244_v29 = vpop.permute.xlu0 %1243  ;;  %v3318_v30 = vpop.eup %3317  ;;  %3337 = vpow2.f32 %v1456_v20  ;;  %v1413_v31 = vsub.f32 0.0, %v4003_v21  ;;  %v1344_v32 = vmul.f32 %v3923_v53, %v1249_v28  ;;  %v1560_v34 = vmul.f32 %v3316_v22, %v3933_v59 }
  0xc2   : > { %v3320_v33 = vpop.eup %3319  ;;  %3339 = vrcp.f32 %v1501_v23  ;;  %v1412_v36 = vsub.f32 0.0, %v4006_v27  ;;  %v1343_v37 = vmul.f32 %v3923_v53, %v1244_v29  ;;  %v1558_v44 = vmul.f32 %v3318_v30, %v3936_v60 }
  0xc3   : > { %v3322_v38 = vpop.eup %3321  ;;  %v1500_v40 = vadd.f32 1.0, %v3320_v33  ;;  %3341 = vpow2.f32 %v1454_v26  ;;  %v1460_v41 = vmul.f32 1.442695, %v1413_v31  ;;  %v4014_v42 = vadd.f32 %v3928_v54, %v1344_v32 }
  0xc4   : > { %v3324_v43 = vpop.eup %3323  ;;  %v1503_v45 = vadd.f32 1.0, %v3322_v38  ;;  %v1458_v46 = vmul.f32 1.442695, %v1412_v36  ;;  %v4018_v47 = vadd.f32 %v3928_v54, %v1343_v37  ;;  %v1259_v59 = vpop.permute.xlu1 %1258 }
  0xc5   : > { %v1254_v48 = vpop.permute.xlu0 %1253  ;;  %v3326_v50 = vpop.eup %3325  ;;  %v1561_v51 = vmul.f32 %v3324_v43, %v3943_v5  ;;  %3343 = vrcp.f32 %v1500_v40  ;;  %v1415_v52 = vsub.f32 0.0, %v4014_v42  ;;  %v1346_v56 = vmul.f32 %v3923_v53, %v1259_v59 }
  0xc6   : > { %v3328_v57 = vpop.eup %3327  ;;  %v1559_v58 = vmul.f32 %v3326_v50, %v3946_v6  ;;  %3345 = vrcp.f32 %v1503_v45  ;;  %v1414_v60 = vsub.f32 0.0, %v4018_v47  ;;  %v1345_v61 = vmul.f32 %v3923_v53, %v1254_v48 }
  0xc7   : > { %v3330_v62 = vpop.eup %3329  ;;  %v1591_v63 = vpack.c.bf16 %v1561_v51, %v1560_v34  ;;  %v1502_v0 = vadd.f32 1.0, %v3328_v57  ;;  %3347 = vpow2.f32 %v1460_v41  ;;  %v1464_v1 = vmul.f32 1.442695, %v1415_v52 }
  0xc8   : > { %v3332_v2 = vpop.eup %3331  ;;  %v1590_v5 = vpack.c.bf16 %v1559_v58, %v1558_v44  ;;  %v1505_v4 = vadd.f32 1.0, %v3330_v62  ;;  %3349 = vpow2.f32 %v1458_v46  ;;  %v1462_v7 = vmul.f32 1.442695, %v1414_v60  ;;  %v1269_v8 = vpop.permute.xlu1 %1268 }
  0xc9   : > { %v1264_v10 = vpop.permute.xlu0 %1263  ;;  %v3334_v11 = vpop.eup %3333  ;;  %v1563_v6 = vmul.f32 %v3332_v2, %v3953_v15  ;;  %3351 = vrcp.f32 %v1502_v0  ;;  %v4028_v12 = vadd.f32 %v3928_v54, %v1346_v56  ;;  %v4031_v13 = vadd.f32 %v3928_v54, %v1345_v61 }
  0xca   : > { %v3336_v14 = vpop.eup %3335  ;;  %v1562_v17 = vmul.f32 %v3334_v11, %v3956_v16  ;;  %3353 = vrcp.f32 %v1505_v4  ;;  %v1348_v18 = vmul.f32 %v3923_v53, %v1269_v8  ;;  %v1347_v19 = vmul.f32 %v3923_v53, %v1264_v10  ;;  %3098 = vmatprep.mubr.msk.bf16.mxu0 %vm1621_vm2, %v1590_v5 }
  0xcb   : > { %v3338_v20 = vpop.eup %3337  ;;  %v1504_v22 = vadd.f32 1.0, %v3336_v14  ;;  %3355 = vpow2.f32 %v1464_v1  ;;  %v1417_v15 = vsub.f32 0.0, %v4028_v12  ;;  %v1416_v23 = vsub.f32 0.0, %v4031_v13  ;;  %3099 = vmatmul.mubr.msk.bf16.vlgmr.msra.gmra.mrb[32].mxu0 %vm1621_vm2, %v1591_v63 }
  0xcc   : > { %v3340_v26 = vpop.eup %3339  ;;  %v1592_v28 = vpack.c.bf16 %v1563_v6, %v1562_v17  ;;  %v1507_v29 = vadd.f32 1.0, %v3338_v20  ;;  %3357 = vpow2.f32 %v1462_v7  ;;  %v4041_v16 = vadd.f32 %v3928_v54, %v1348_v18  ;;  %v1279_v30 = vpop.permute.xlu1 %1278 }
  0xcd   : > { %v1274_v31 = vpop.permute.xlu0 %1273  ;;  %v3342_v32 = vpop.eup %3341  ;;  %v1565_v33 = vmul.f32 %v3340_v26, %v3963_v24  ;;  %3359 = vrcp.f32 %v1504_v22  ;;  %v1468_v34 = vmul.f32 1.442695, %v1417_v15  ;;  %v1466_v36 = vmul.f32 1.442695, %v1416_v23 }
  0xce   : > { %3361 = vrcp.f32 %v1507_v29  ;;  %v1506_v37 = vadd.f32 1.0, %v3342_v32  ;;  %v1419_v38 = vsub.f32 0.0, %v4041_v16  ;;  %v4046_v40 = vadd.f32 %v3928_v54, %v1347_v19  ;;  %3102 = vmatprep.mubr.msk.bf16.mxu0 %vm1621_vm2, %v1592_v28 }
  0xcf   : > { %v3344_v41 = vpop.eup %3343  ;;  %3363 = vpow2.f32 %v1468_v34  ;;  %v1350_v43 = vmul.f32 %v3923_v53, %v1279_v30  ;;  %v1349_v44 = vmul.f32 %v3923_v53, %v1274_v31 }
  0xd0   : > { %v3346_v45 = vpop.eup %3345  ;;  %v1564_v24 = vmul.f32 %v3344_v41, %v3966_v25  ;;  %3365 = vrcp.f32 %v1506_v37  ;;  %v1472_v46 = vmul.f32 1.442695, %v1419_v38  ;;  %v1418_v59 = vsub.f32 0.0, %v4046_v40  ;;  %v1289_v48 = vpop.permute.xlu1 %1288 }
  0xd1   : > { %v1284_v50 = vpop.permute.xlu0 %1283  ;;  %v3348_v51 = vpop.eup %3347  ;;  %v1567_v52 = vmul.f32 %v3346_v45, %v3973_v35  ;;  %3367 = vpow2.f32 %v1466_v36  ;;  %v4055_v56 = vadd.f32 %v3928_v54, %v1350_v43  ;;  %v4058_v57 = vadd.f32 %v3928_v54, %v1349_v44 }
  0xd2   : > { %v3350_v58 = vpop.eup %3349  ;;  %v1593_v60 = vpack.c.bf16 %v1565_v33, %v1564_v24  ;;  %v1509_v61 = vadd.f32 1.0, %v3348_v51  ;;  %3369 = vpow2.f32 %v1472_v46  ;;  %v1470_v25 = vmul.f32 1.442695, %v1418_v59 }
  0xd3   : > { %v3352_v62 = vpop.eup %3351  ;;  %v1508_v63 = vadd.f32 1.0, %v3350_v58  ;;  %v1421_v0 = vsub.f32 0.0, %v4055_v56  ;;  %v1420_v1 = vsub.f32 0.0, %v4058_v57  ;;  %v1352_v35 = vmul.f32 %v3923_v53, %v1289_v48 }
  0xd4   : > { %v3354_v2 = vpop.eup %3353  ;;  %v1566_v5 = vmul.f32 %v3352_v62, %v3976_v39  ;;  %3371 = vrcp.f32 %v1509_v61  ;;  %v1351_v4 = vmul.f32 %v3923_v53, %v1284_v50  ;;  %3103 = vmatmul.mubr.msk.bf16.gmra.mrb[36].mxu0 %vm1621_vm2, %v1593_v60  ;;  %v1299_v7 = vpop.permute.xlu1 %1298 }
  0xd5   : > { %v1294_v8 = vpop.permute.xlu0 %1293  ;;  %v3356_v10 = vpop.eup %3355  ;;  %v1569_v11 = vmul.f32 %v3354_v2, %v3983_v49  ;;  %3373 = vrcp.f32 %v1508_v63  ;;  %v1476_v6 = vmul.f32 1.442695, %v1421_v0  ;;  %v1474_v14 = vmul.f32 1.442695, %v1420_v1 }
  0xd6   : > { %v3358_v17 = vpop.eup %3357  ;;  %v1594_v18 = vpack.c.bf16 %v1567_v52, %v1566_v5  ;;  %v1511_v19 = vadd.f32 1.0, %v3356_v10  ;;  %3375 = vpow2.f32 %v1470_v25  ;;  %v4068_v20 = vadd.f32 %v3928_v54, %v1352_v35 }
  0xd7   : > { %v3360_v39 = vpop.eup %3359  ;;  %v1510_v22 = vadd.f32 1.0, %v3358_v17  ;;  %3377 = vpow2.f32 %v1476_v6  ;;  %v4071_v15 = vadd.f32 %v3928_v54, %v1351_v4  ;;  %v1354_v23 = vmul.f32 %v3923_v53, %v1299_v7 }
  0xd8   : > { %v3362_v26 = vpop.eup %3361  ;;  %v1568_v49 = vmul.f32 %v3360_v39, %v3986_v55  ;;  %3379 = vrcp.f32 %v1511_v19  ;;  %v1423_v28 = vsub.f32 0.0, %v4068_v20  ;;  %v1353_v29 = vmul.f32 %v3923_v53, %v1294_v8  ;;  %3106 = vmatprep.mubr.msk.bf16.mxu0 %vm1621_vm2, %v1594_v18  ;;  %v1309_v30 = vpop.permute.xlu1 %1308 }
  0xd9   : > { %v1304_v31 = vpop.permute.xlu0 %1303  ;;  %v3364_v32 = vpop.eup %3363  ;;  %v1571_v33 = vmul.f32 %v3362_v26, %v3993_v3  ;;  %3381 = vrcp.f32 %v1510_v22  ;;  %v1422_v34 = vsub.f32 0.0, %v4071_v15  ;;  %v4081_v36 = vadd.f32 %v3928_v54, %v1354_v23 }
  0xda   : > { %v3366_v37 = vpop.eup %3365  ;;  %v1595_v55 = vpack.c.bf16 %v1569_v11, %v1568_v49  ;;  %v1513_v38 = vadd.f32 1.0, %v3364_v32  ;;  %3383 = vpow2.f32 %v1474_v14  ;;  %v1480_v41 = vmul.f32 1.442695, %v1423_v28 }
  0xdb   : > { %v3368_v43 = vpop.eup %3367  ;;  %v1570_v44 = vmul.f32 %v3366_v37, %v3996_v9  ;;  %v1478_v45 = vmul.f32 1.442695, %v1422_v34  ;;  %v1425_v24 = vsub.f32 0.0, %v4081_v36  ;;  %v4086_v46 = vadd.f32 %v3928_v54, %v1353_v29 }
  0xdc   : > { %v3370_v3 = vpop.eup %3369  ;;  %3385 = vrcp.f32 %v1513_v38  ;;  %v1512_v59 = vadd.f32 1.0, %v3368_v43  ;;  %v1356_v48 = vmul.f32 %v3923_v53, %v1309_v30  ;;  %v1355_v50 = vmul.f32 %v3923_v53, %v1304_v31  ;;  %3107 = vmatmul.mubr.msk.bf16.gmra.mrb[40].mxu0 %vm1621_vm2, %v1595_v55  ;;  %v1319_v51 = vpop.permute.xlu1 %1318 }
  0xdd   : > { %v1314_v52 = vpop.permute.xlu0 %1313  ;;  %v1596_v58 = vpack.c.bf16 %v1571_v33, %v1570_v44  ;;  %v1515_v60 = vadd.f32 1.0, %v3370_v3  ;;  %3387 = vpow2.f32 %v1480_v41  ;;  %v1484_v9 = vmul.f32 1.442695, %v1425_v24 }
  0xde   : > { %v3372_v61 = vpop.eup %3371  ;;  %3389 = vrcp.f32 %v1512_v59  ;;  %v1424_v25 = vsub.f32 0.0, %v4086_v46  ;;  %v4093_v62 = vadd.f32 %v3928_v54, %v1356_v48  ;;  %v4096_v63 = vadd.f32 %v3928_v54, %v1355_v50 }
  0xdf   : > { %v3374_v0 = vpop.eup %3373  ;;  %v1573_v1 = vmul.f32 %v3372_v61, %v4003_v21  ;;  %3391 = vrcp.f32 %v1515_v60  ;;  %v1358_v35 = vmul.f32 %v3923_v53, %v1319_v51  ;;  %v1357_v2 = vmul.f32 %v3923_v53, %v1314_v52  ;;  %3110 = vmatprep.mubr.msk.bf16.mxu0 %vm1621_vm2, %v1596_v58 }
  0xe0   : > { %v3376_v5 = vpop.eup %3375  ;;  %v1572_v4 = vmul.f32 %v3374_v0, %v4006_v27  ;;  %3393 = vpow2.f32 %v1478_v45  ;;  %v1482_v7 = vmul.f32 1.442695, %v1424_v25  ;;  %v1427_v8 = vsub.f32 0.0, %v4093_v62 }
  0xe1   : > { %v3378_v10 = vpop.eup %3377  ;;  %v1514_v11 = vadd.f32 1.0, %v3376_v5  ;;  %3395 = vpow2.f32 %v1484_v9  ;;  %v1426_v6 = vsub.f32 0.0, %v4096_v63  ;;  %v4106_v21 = vadd.f32 %v3928_v54, %v1358_v35 }
  0xe2   : > { %v3380_v14 = vpop.eup %3379  ;;  %v1597_v17 = vpack.c.bf16 %v1573_v1, %v1572_v4  ;;  %v1517_v53 = vadd.f32 1.0, %v3378_v10  ;;  %3397 = vpow2.f32 %v1482_v7  ;;  %v1488_v18 = vmul.f32 1.442695, %v1427_v8 }
  0xe3   : > { %v3382_v19 = vpop.eup %3381  ;;  %v1575_v27 = vmul.f32 %v3380_v14, %v4014_v42  ;;  %3399 = vrcp.f32 %v1514_v11  ;;  %v1486_v39 = vmul.f32 1.442695, %v1426_v6  ;;  %v1429_v22 = vsub.f32 0.0, %v4106_v21 }
  0xe4   : > { %v3384_v23 = vpop.eup %3383  ;;  %v1574_v26 = vmul.f32 %v3382_v19, %v4018_v47  ;;  %3401 = vrcp.f32 %v1517_v53  ;;  %v4112_v49 = vadd.f32 %v3928_v54, %v1357_v2  ;;  %3111 = vmatmul.mubr.msk.bf16.gmra.mrb[44].mxu0 %vm1621_vm2, %v1597_v17 }
  0xe5   : > { %v1516_v28 = vadd.f32 1.0, %v3384_v23  ;;  %3403 = vpow2.f32 %v1488_v18  ;;  %v1492_v29 = vmul.f32 1.442695, %v1429_v22 }
  0xe6   : > { %v3386_v30 = vpop.eup %3385  ;;  %v1598_v31 = vpack.c.bf16 %v1575_v27, %v1574_v26  ;;  %3405 = vpow2.f32 %v1486_v39  ;;  %v1428_v42 = vsub.f32 0.0, %v4112_v49 }
  0xe7   : > { %v3388_v32 = vpop.eup %3387  ;;  %v1577_v33 = vmul.f32 %v3386_v30, %v4028_v12  ;;  %3407 = vrcp.f32 %v1516_v28 }
  0xe8   : > { %v3390_v34 = vpop.eup %3389  ;;  %v1519_v47 = vadd.f32 1.0, %v3388_v32  ;;  %3409 = vpow2.f32 %v1492_v29  ;;  %v1490_v37 = vmul.f32 1.442695, %v1428_v42  ;;  %3114 = vmatprep.mubr.msk.bf16.mxu0 %vm1621_vm2, %v1598_v31 }
  0xe9   : > { %v3392_v54 = vpop.eup %3391  ;;  %v1576_v55 = vmul.f32 %v3390_v34, %v4031_v13 }
  0xea   : > { %v3394_v38 = vpop.eup %3393  ;;  %3411 = vrcp.f32 %v1519_v47  ;;  %v1579_v24 = vmul.f32 %v3392_v54, %v4041_v16 }
  0xeb   : > { %v3396_v41 = vpop.eup %3395  ;;  %v1599_v43 = vpack.c.bf16 %v1577_v33, %v1576_v55  ;;  %v1518_v44 = vadd.f32 1.0, %v3394_v38  ;;  %3413 = vpow2.f32 %v1490_v37 }
  0xec   : > { %v3398_v45 = vpop.eup %3397  ;;  %v1521_v12 = vadd.f32 1.0, %v3396_v41 }
  0xed   : > { %v3400_v3 = vpop.eup %3399  ;;  %3415 = vrcp.f32 %v1518_v44  ;;  %v1520_v59 = vadd.f32 1.0, %v3398_v45  ;;  %3115 = vmatmul.mubr.msk.bf16.gmra.mrb[48].mxu0 %vm1621_vm2, %v1599_v43 }
  0xee   : > { %v3402_v48 = vpop.eup %3401  ;;  %v1578_v50 = vmul.f32 %v3400_v3, %v4046_v40  ;;  %3417 = vrcp.f32 %v1521_v12 }
  0xef   : > { %v3404_v13 = vpop.eup %3403  ;;  %3419 = vrcp.f32 %v1520_v59  ;;  %v1581_v58 = vmul.f32 %v3402_v48, %v4055_v56 }
  0xf0   : > { %v3406_v51 = vpop.eup %3405  ;;  %v1600_v52 = vpack.c.bf16 %v1579_v24, %v1578_v50  ;;  %v1523_v60 = vadd.f32 1.0, %v3404_v13 }
  0xf1   : > { %v3408_v9 = vpop.eup %3407  ;;  %v1522_v61 = vadd.f32 1.0, %v3406_v51 }
  0xf2   : > { %v3410_v16 = vpop.eup %3409  ;;  %v1580_v25 = vmul.f32 %v3408_v9, %v4058_v57  ;;  %3421 = vrcp.f32 %v1523_v60  ;;  %3118 = vmatprep.mubr.msk.bf16.mxu0 %vm1621_vm2, %v1600_v52 }
  0xf3   : > { %3423 = vrcp.f32 %v1522_v61  ;;  %v1525_v0 = vadd.f32 1.0, %v3410_v16 }
  0xf4   : > { %v3412_v1 = vpop.eup %3411  ;;  %v1601_v40 = vpack.c.bf16 %v1581_v58, %v1580_v25 }
  0xf5   : > { %v3414_v35 = vpop.eup %3413  ;;  %3425 = vrcp.f32 %v1525_v0  ;;  %v1583_v2 = vmul.f32 %v3412_v1, %v4068_v20 }
  0xf6   : > { %v1524_v5 = vadd.f32 1.0, %v3414_v35  ;;  %3119 = vmatmul.mubr.msk.bf16.gmra.mrb[52].mxu0 %vm1621_vm2, %v1601_v40 }
  0xf7   : > { %v3416_v56 = vpop.eup %3415 }
  0xf8   : > { %v3418_v4 = vpop.eup %3417  ;;  %v1582_v7 = vmul.f32 %v3416_v56, %v4071_v15  ;;  %3427 = vrcp.f32 %v1524_v5 }
  0xf9   : > { %v3420_v57 = vpop.eup %3419  ;;  %v1585_v8 = vmul.f32 %v3418_v4, %v4081_v36 }
  0xfa   : > { %v1602_v10 = vpack.c.bf16 %v1583_v2, %v1582_v7  ;;  %v1584_v11 = vmul.f32 %v3420_v57, %v4086_v46 }
  0xfc   : > { %v3422_v6 = vpop.eup %3421  ;;  %v1603_v14 = vpack.c.bf16 %v1585_v8, %v1584_v11  ;;  %3122 = vmatprep.mubr.msk.bf16.mxu0 %vm1621_vm2, %v1602_v10 }
  0xfd   : > { %v3424_v17 = vpop.eup %3423  ;;  %v1587_v20 = vmul.f32 %v3422_v6, %v4093_v62  ;;  %v4141_v62 = vld [vmem:[%s4859_s4] ss:$0 sm:$0xff]  ;;  %v3066_v39 = vpop.f32.mrb[0].mxu0 }
  0xfe   : > { %3123 = vmatmul.mubr.msk.bf16.gmra.mrb[56].mxu0 %vm1621_vm2, %v1603_v14  ;;  %v1586_v53 = vmul.f32 %v3424_v17, %v4096_v63  ;;  %v4144_v63 = vadd.f32 %v3066_v39, %v4141_v62  ;;  %v809_v22 = vpop.f32.mrb[1].mxu0 }
  0xff   : > { %v3426_v18 = vpop.eup %3425  ;;  %v3067_v23 = vpop.f32.mrb[2].mxu0 }
 0x100   : > { %v1604_v15 = vpack.c.bf16 %v1587_v20, %v1586_v53  ;;  %v1589_v19 = vmul.f32 %v3426_v18, %v4106_v21  ;;  %v4147_v21 = vadd.f32 %v4141_v62, %v809_v22  ;;  %v938_v26 = vsub.f32 0.0, %v4144_v63  ;;  %v812_v28 = vpop.f32.mrb[3].mxu0 }
 0x101   : > { %v4155_v30 = vadd.f32 %v4141_v62, %v812_v28 }
 0x102   : > { %v3428_v27 = vpop.eup %3427  ;;  %3126 = vmatprep.mubr.msk.bf16.mxu1 %vm1621_vm2, %v1604_v15  ;;  %v936_v29 = vsub.f32 0.0, %v4147_v21  ;;  %v972_v31 = vmul.f32 1.442695, %v938_v26 }
 0x103   : > { %v1588_v36 = vmul.f32 %v3428_v27, %v4112_v49  ;;  %v4151_v49 = vadd.f32 %v3067_v23, %v4141_v62  ;;  %v937_v33 = vsub.f32 0.0, %v4155_v30 }
 0x104   : > { %v968_v32 = vmul.f32 1.442695, %v936_v29  ;;  %3429 = vpow2.f32 %v972_v31 }
 0x105   : > { %v1605_v46 = vpack.c.bf16 %v1589_v19, %v1588_v36  ;;  %v939_v42 = vsub.f32 0.0, %v4151_v49  ;;  %v970_v47 = vmul.f32 1.442695, %v937_v33  ;;  %v3070_v37 = vpop.f32.mrb[4].mxu0 }
 0x106   : > { %3431 = vpow2.f32 %v968_v32  ;;  %v4160_v54 = vadd.f32 %v3070_v37, %v4141_v62  ;;  %v825_v55 = vpop.f32.mrb[5].mxu0 }
 0x107   : > { %3127 = vmatmul.mubr.msk.bf16.vlgmr.msra.gmra.mrb[0].mxu1 %vm1621_vm2, %v1605_v46  ;;  %v974_v34 = vmul.f32 1.442695, %v939_v42  ;;  %v4163_v38 = vadd.f32 %v4141_v62, %v825_v55  ;;  %v3071_v41 = vpop.f32.mrb[6].mxu0 }
 0x108   : > { %v942_v43 = vsub.f32 0.0, %v4160_v54  ;;  %v4167_v44 = vadd.f32 %v3071_v41, %v4141_v62  ;;  %v828_v45 = vpop.f32.mrb[7].mxu0 }
 0x109   : > { %3433 = vpow2.f32 %v974_v34  ;;  %v940_v24 = vsub.f32 0.0, %v4163_v38  ;;  %v4171_v12 = vadd.f32 %v4141_v62, %v828_v45 }
 0x10a   : > { %3435 = vpow2.f32 %v970_v47  ;;  %v980_v3 = vmul.f32 1.442695, %v942_v43  ;;  %v943_v59 = vsub.f32 0.0, %v4167_v44 }
 0x10b   : > { %v976_v48 = vmul.f32 1.442695, %v940_v24  ;;  %v941_v50 = vsub.f32 0.0, %v4171_v12 }
 0x10c   : > { %3437 = vpow2.f32 %v980_v3  ;;  %v982_v13 = vmul.f32 1.442695, %v943_v59 }
 0x10d   : > { %3439 = vpow2.f32 %v976_v48  ;;  %v978_v51 = vmul.f32 1.442695, %v941_v50  ;;  %v3074_v52 = vpop.f32.mrb[8].mxu0 }
 0x10e   : > { %v3430_v58 = vpop.eup %3429  ;;  %3441 = vpow2.f32 %v982_v13  ;;  %v4176_v60 = vadd.f32 %v3074_v52, %v4141_v62  ;;  %v841_v9 = vpop.f32.mrb[9].mxu0 }
 0x10f   : > { %v1034_v16 = vadd.f32 1.0, %v3430_v58  ;;  %3443 = vpow2.f32 %v978_v51  ;;  %v4179_v25 = vadd.f32 %v4141_v62, %v841_v9  ;;  %v3075_v0 = vpop.f32.mrb[10].mxu0 }
 0x110   : > { %v3432_v61 = vpop.eup %3431  ;;  %v946_v35 = vsub.f32 0.0, %v4176_v60  ;;  %v4183_v2 = vadd.f32 %v3075_v0, %v4141_v62  ;;  %v844_v5 = vpop.f32.mrb[11].mxu0 }
 0x111   : > { %v1032_v40 = vadd.f32 1.0, %v3432_v61  ;;  %3445 = vrcp.f32 %v1034_v16  ;;  %v944_v7 = vsub.f32 0.0, %v4179_v25  ;;  %v4187_v57 = vadd.f32 %v4141_v62, %v844_v5 }
 0x112   : > { %v988_v10 = vmul.f32 1.442695, %v946_v35  ;;  %v947_v11 = vsub.f32 0.0, %v4183_v2 }
 0x113   : > { %v3434_v1 = vpop.eup %3433  ;;  %3447 = vrcp.f32 %v1032_v40  ;;  %v984_v6 = vmul.f32 1.442695, %v944_v7  ;;  %v945_v14 = vsub.f32 0.0, %v4187_v57 }
 0x114   : > { %v3436_v56 = vpop.eup %3435  ;;  %v1035_v4 = vadd.f32 1.0, %v3434_v1  ;;  %v990_v17 = vmul.f32 1.442695, %v947_v11 }
 0x115   : > { %v1033_v8 = vadd.f32 1.0, %v3436_v56  ;;  %v986_v20 = vmul.f32 1.442695, %v945_v14  ;;  %v3078_v53 = vpop.f32.mrb[12].mxu0 }
 0x116   : > { %3449 = vrcp.f32 %v1035_v4  ;;  %v3438_v18 = vpop.eup %3437  ;;  %v4192_v15 = vadd.f32 %v3078_v53, %v4141_v62  ;;  %v857_v19 = vpop.f32.mrb[13].mxu0 }
 0x117   : > { %3451 = vrcp.f32 %v1033_v8  ;;  %v3440_v27 = vpop.eup %3439  ;;  %v1038_v36 = vadd.f32 1.0, %v3438_v18  ;;  %v4195_v46 = vadd.f32 %v4141_v62, %v857_v19  ;;  %v3079_v39 = vpop.f32.mrb[14].mxu0 }
 0x118   : > { %3453 = vpow2.f32 %v988_v10  ;;  %v3442_v22 = vpop.eup %3441  ;;  %v1036_v23 = vadd.f32 1.0, %v3440_v27  ;;  %v950_v26 = vsub.f32 0.0, %v4192_v15  ;;  %v4199_v28 = vadd.f32 %v3079_v39, %v4141_v62  ;;  %v860_v29 = vpop.f32.mrb[15].mxu0 }
 0x119   : > { %3455 = vpow2.f32 %v984_v6  ;;  %v3444_v31 = vpop.eup %3443  ;;  %v1039_v42 = vadd.f32 1.0, %v3442_v22  ;;  %v948_v32 = vsub.f32 0.0, %v4195_v46  ;;  %v4203_v33 = vadd.f32 %v4141_v62, %v860_v29 }
 0x11a   : > { %3457 = vpow2.f32 %v990_v17  ;;  %v1037_v34 = vadd.f32 1.0, %v3444_v31  ;;  %v996_v47 = vmul.f32 1.442695, %v950_v26  ;;  %v951_v37 = vsub.f32 0.0, %v4199_v28 }
 0x11b   : > { %3459 = vpow2.f32 %v986_v20  ;;  %v3446_v55 = vpop.eup %3445  ;;  %v992_v41 = vmul.f32 1.442695, %v948_v32  ;;  %v949_v43 = vsub.f32 0.0, %v4203_v33 }
 0x11c   : > { %3461 = vrcp.f32 %v1038_v36  ;;  %v4208_v24 = vmul.f32 %v3446_v55, %v4144_v63  ;;  %v998_v3 = vmul.f32 1.442695, %v951_v37 }
 0x11d   : > { %3463 = vrcp.f32 %v1036_v23  ;;  %v3448_v45 = vpop.eup %3447  ;;  %v994_v50 = vmul.f32 1.442695, %v949_v43  ;;  %v3082_v13 = vpop.f32.mrb[16].mxu0 }
 0x11e   : > { %3465 = vrcp.f32 %v1039_v42  ;;  %v4211_v48 = vmul.f32 %v3448_v45, %v4147_v21  ;;  %v4217_v58 = vadd.f32 %v3082_v13, %v4141_v62  ;;  %v873_v9 = vpop.f32.mrb[17].mxu0 }
 0x11f   : > { %3467 = vrcp.f32 %v1037_v34  ;;  %v4223_v21 = vadd.f32 %v4141_v62, %v873_v9  ;;  %v3083_v16 = vpop.f32.mrb[18].mxu0 }
 0x120   : > { %v3450_v59 = vpop.eup %3449  ;;  %3469 = vpow2.f32 %v996_v47  ;;  %v954_v40 = vsub.f32 0.0, %v4217_v58  ;;  %v876_v35 = vpop.f32.mrb[19].mxu0  ;;  %v4232_v7 = vadd.f32 %v3083_v16, %v4141_v62 }
 0x121   : > { %v3452_v51 = vpop.eup %3451  ;;  %v4214_v52 = vmul.f32 %v3450_v59, %v4151_v49  ;;  %3471 = vpow2.f32 %v992_v41  ;;  %v952_v4 = vsub.f32 0.0, %v4223_v21  ;;  %v4235_v6 = vadd.f32 %v4141_v62, %v876_v35 }
 0x122   : > { %v3454_v63 = vpop.eup %3453  ;;  %v4220_v61 = vmul.f32 %v3452_v51, %v4155_v30  ;;  %3473 = vpow2.f32 %v998_v3  ;;  %v1004_v11 = vmul.f32 1.442695, %v954_v40  ;;  %v955_v53 = vsub.f32 0.0, %v4232_v7 }
 0x123   : > { %v3456_v0 = vpop.eup %3455  ;;  %v1042_v49 = vadd.f32 1.0, %v3454_v63  ;;  %3475 = vpow2.f32 %v994_v50  ;;  %v1000_v20 = vmul.f32 1.442695, %v952_v4  ;;  %v953_v27 = vsub.f32 0.0, %v4235_v6 }
 0x124   : > { %v3458_v5 = vpop.eup %3457  ;;  %v1040_v30 = vadd.f32 1.0, %v3456_v0  ;;  %v1006_v22 = vmul.f32 1.442695, %v955_v53 }
 0x125   : > { %v3460_v8 = vpop.eup %3459  ;;  %3477 = vrcp.f32 %v1042_v49  ;;  %v1043_v10 = vadd.f32 1.0, %v3458_v5  ;;  %v3086_v23 = vpop.f32.mrb[20].mxu0  ;;  %v1002_v31 = vmul.f32 1.442695, %v953_v27 }
 0x126   : > { %v3462_v14 = vpop.eup %3461  ;;  %3479 = vrcp.f32 %v1040_v30  ;;  %v1041_v17 = vadd.f32 1.0, %v3460_v8  ;;  %v4249_v42 = vadd.f32 %v3086_v23, %v4141_v62 }
 0x127   : > { %v3464_v18 = vpop.eup %3463  ;;  %v4239_v19 = vmul.f32 %v3462_v14, %v4160_v54  ;;  %3481 = vrcp.f32 %v1043_v10  ;;  %v889_v54 = vpop.f32.mrb[21].mxu0 }
 0x128   : > { %v3466_v36 = vpop.eup %3465  ;;  %v4243_v39 = vmul.f32 %v3464_v18, %v4163_v38  ;;  %3483 = vrcp.f32 %v1041_v17  ;;  %v4255_v38 = vadd.f32 %v4141_v62, %v889_v54  ;;  %v3087_v47 = vpop.f32.mrb[22].mxu0  ;;  %v958_v41 = vsub.f32 0.0, %v4249_v42 }
 0x129   : > { %v3468_v26 = vpop.eup %3467  ;;  %v4246_v29 = vmul.f32 %v3466_v36, %v4167_v44  ;;  %3485 = vpow2.f32 %v1004_v11  ;;  %v892_v43 = vpop.f32.mrb[23].mxu0  ;;  %v4264_v9 = vadd.f32 %v3087_v47, %v4141_v62 }
 0x12a   : > { %v3470_v32 = vpop.eup %3469  ;;  %v4252_v34 = vmul.f32 %v3468_v26, %v4171_v12  ;;  %3487 = vpow2.f32 %v1000_v20  ;;  %v956_v59 = vsub.f32 0.0, %v4255_v38  ;;  %v1012_v51 = vmul.f32 1.442695, %v958_v41 }
 0x12b   : > { %v3472_v37 = vpop.eup %3471  ;;  %v1046_v55 = vadd.f32 1.0, %v3470_v32  ;;  %3489 = vpow2.f32 %v1006_v22  ;;  %v4267_v0 = vadd.f32 %v4141_v62, %v892_v43  ;;  %v959_v40 = vsub.f32 0.0, %v4264_v9 }
 0x12c   : > { %v3474_v45 = vpop.eup %3473  ;;  %v1044_v12 = vadd.f32 1.0, %v3472_v37  ;;  %3491 = vpow2.f32 %v1002_v31  ;;  %v1008_v16 = vmul.f32 1.442695, %v956_v59 }
 0x12d   : > { %v3476_v50 = vpop.eup %3475  ;;  %3493 = vrcp.f32 %v1046_v55  ;;  %v1047_v13 = vadd.f32 1.0, %v3474_v45  ;;  %v957_v30 = vsub.f32 0.0, %v4267_v0  ;;  %v3090_v4 = vpop.f32.mrb[24].mxu0  ;;  %v1014_v11 = vmul.f32 1.442695, %v959_v40 }
 0x12e   : > { %3495 = vrcp.f32 %v1044_v12  ;;  %v1045_v63 = vadd.f32 1.0, %v3476_v50  ;;  %v4278_v14 = vadd.f32 %v3090_v4, %v4141_v62  ;;  %v905_v17 = vpop.f32.mrb[25].mxu0 }
 0x12f   : > { %v3478_v49 = vpop.eup %3477  ;;  %3497 = vrcp.f32 %v1047_v13  ;;  %v4284_v18 = vadd.f32 %v4141_v62, %v905_v17  ;;  %v3091_v27 = vpop.f32.mrb[26].mxu0 }
 0x130   : > { %v3480_v35 = vpop.eup %3479  ;;  %v4271_v5 = vmul.f32 %v3478_v49, %v4176_v60  ;;  %3499 = vrcp.f32 %v1045_v63  ;;  %v1010_v60 = vmul.f32 1.442695, %v957_v30  ;;  %v962_v22 = vsub.f32 0.0, %v4278_v14  ;;  %v908_v26 = vpop.f32.mrb[27].mxu0 }
 0x131   : > { %v3482_v8 = vpop.eup %3481  ;;  %v4275_v10 = vmul.f32 %v3480_v35, %v4179_v25  ;;  %3501 = vpow2.f32 %v1012_v51  ;;  %v4291_v23 = vadd.f32 %v3091_v27, %v4141_v62  ;;  %v960_v32 = vsub.f32 0.0, %v4284_v18  ;;  %v3298_v35 = vld [vmem:[%s4865_s10] sm:$0xff]  }
 0x132   : > { %v3484_v20 = vpop.eup %3483  ;;  %v4281_v53 = vmul.f32 %v3482_v8, %v4183_v2  ;;  %3503 = vpow2.f32 %v1008_v16  ;;  %v1020_v45 = vmul.f32 1.442695, %v962_v22  ;;  %v4300_v12 = vadd.f32 %v4141_v62, %v908_v26  ;;  %3130 = vmatprep.subr.bf16.mxu1 %v3298_v35 }
 0x133   : > { %v3486_v36 = vpop.eup %3485  ;;  %v4287_v25 = vmul.f32 %v3484_v20, %v4187_v57  ;;  %3505 = vpow2.f32 %v1014_v11  ;;  %v963_v55 = vsub.f32 0.0, %v4291_v23  ;;  %v1016_v13 = vmul.f32 1.442695, %v960_v32  ;;  %3131 = vmatpush3.bf16.msra.mxu1 %v3298_v35 }
 0x134   : > { %v3488_v31 = vpop.eup %3487  ;;  %v1050_v54 = vadd.f32 1.0, %v3486_v36  ;;  %3507 = vpow2.f32 %v1010_v60  ;;  %v961_v49 = vsub.f32 0.0, %v4300_v12 }
 0x135   : > { %v3490_v47 = vpop.eup %3489  ;;  %v1048_v37 = vadd.f32 1.0, %v3488_v31  ;;  %v1022_v16 = vmul.f32 1.442695, %v963_v55  ;;  %v3094_v40 = vpop.f32.mrb[28].mxu0 }
 0x136   : > { %v3492_v41 = vpop.eup %3491  ;;  %3509 = vrcp.f32 %v1050_v54  ;;  %v1051_v43 = vadd.f32 1.0, %v3490_v47  ;;  %v4313_v8 = vadd.f32 %v3094_v40, %v4141_v62  ;;  %v921_v11 = vpop.f32.mrb[29].mxu0  ;;  %v1018_v20 = vmul.f32 1.442695, %v961_v49 }
 0x137   : > { %v3494_v59 = vpop.eup %3493  ;;  %3511 = vrcp.f32 %v1048_v37  ;;  %v1049_v50 = vadd.f32 1.0, %v3492_v41  ;;  %v4319_v60 = vadd.f32 %v4141_v62, %v921_v11  ;;  %v3095_v27 = vpop.f32.mrb[30].mxu0 }
 0x138   : > { %v3496_v51 = vpop.eup %3495  ;;  %v4303_v63 = vmul.f32 %v3494_v59, %v4192_v15  ;;  %3513 = vrcp.f32 %v1051_v43  ;;  %v966_v22 = vsub.f32 0.0, %v4313_v8  ;;  %v4326_v26 = vadd.f32 %v3095_v27, %v4141_v62  ;;  %v924_v31 = vpop.f32.mrb[31].mxu0 }
 0x139   : > { %v3498_v30 = vpop.eup %3497  ;;  %v4310_v4 = vmul.f32 %v3496_v51, %v4195_v46  ;;  %3515 = vrcp.f32 %v1049_v50  ;;  %v964_v47 = vsub.f32 0.0, %v4319_v60 }
 0x13a   : > { %v3500_v15 = vpop.eup %3499  ;;  %v4316_v17 = vmul.f32 %v3498_v30, %v4199_v28  ;;  %3517 = vpow2.f32 %v1020_v45  ;;  %v1028_v59 = vmul.f32 1.442695, %v966_v22  ;;  %v967_v50 = vsub.f32 0.0, %v4326_v26 }
 0x13b   : > { %v3502_v36 = vpop.eup %3501  ;;  %v4322_v46 = vmul.f32 %v3500_v15, %v4203_v33  ;;  %3519 = vpow2.f32 %v1016_v13  ;;  %v3299_v33 = vld [vmem:[%s4865_s10 + $0x8] sm:$0xff]   ;;  %v1024_v51 = vmul.f32 1.442695, %v964_v47 }
 0x13c   : > { %v3504_v28 = vpop.eup %3503  ;;  %v1054_v32 = vadd.f32 1.0, %v3502_v36  ;;  %3521 = vpow2.f32 %v1022_v16  ;;  %3132 = vmatprep.subr.bf16.mxu1 %v3299_v33  ;;  %v4338_v16 = vadd.f32 %v4141_v62, %v924_v31  ;;  %v1030_v40 = vmul.f32 1.442695, %v967_v50 }
 0x13d   : > { %v3506_v37 = vpop.eup %3505  ;;  %v1052_v41 = vadd.f32 1.0, %v3504_v28  ;;  %3523 = vpow2.f32 %v1018_v20  ;;  %3133 = vmatpush3.bf16.msra.mxu1 %v3299_v33 }
 0x13e   : > { %v3508_v43 = vpop.eup %3507  ;;  %3525 = vrcp.f32 %v1054_v32  ;;  %v1055_v45 = vadd.f32 1.0, %v3506_v37  ;;  %v965_v11 = vsub.f32 0.0, %v4338_v16 }
 0x13f   : > { %3527 = vrcp.f32 %v1052_v41  ;;  %v1053_v13 = vadd.f32 1.0, %v3508_v43 }
 0x140   : > { %v3510_v49 = vpop.eup %3509  ;;  %3529 = vrcp.f32 %v1055_v45  ;;  %v1026_v36 = vmul.f32 1.442695, %v965_v11 }
 0x141   : > { %v3512_v35 = vpop.eup %3511  ;;  %v4341_v30 = vmul.f32 %v3510_v49, %v4217_v58  ;;  %3531 = vrcp.f32 %v1053_v13 }
 0x142   : > { %v3514_v15 = vpop.eup %3513  ;;  %v4345_v20 = vmul.f32 %v3512_v35, %v4223_v21  ;;  %3533 = vpow2.f32 %v1028_v59 }
 0x143   : > { %v3516_v27 = vpop.eup %3515  ;;  %v4348_v62 = vmul.f32 %v3514_v15, %v4232_v7  ;;  %3535 = vpow2.f32 %v1024_v51 }
 0x144   : > { %v3518_v22 = vpop.eup %3517  ;;  %v4351_v31 = vmul.f32 %v3516_v27, %v4235_v6  ;;  %3537 = vpow2.f32 %v1030_v40 }
 0x145   : > { %v3520_v58 = vpop.eup %3519  ;;  %v1058_v32 = vadd.f32 1.0, %v3518_v22  ;;  %3539 = vpow2.f32 %v1026_v36 }
 0x146   : > { %v3522_v21 = vpop.eup %3521  ;;  %v1056_v33 = vadd.f32 1.0, %v3520_v58 }
 0x147   : > { %v3524_v7 = vpop.eup %3523  ;;  %3541 = vrcp.f32 %v1058_v32  ;;  %v1059_v37 = vadd.f32 1.0, %v3522_v21 }
 0x148   : > { %v3526_v41 = vpop.eup %3525  ;;  %3543 = vrcp.f32 %v1056_v33  ;;  %v1057_v43 = vadd.f32 1.0, %v3524_v7 }
 0x149   : > { %v3528_v6 = vpop.eup %3527  ;;  %v4358_v45 = vmul.f32 %v3526_v41, %v4249_v42  ;;  %3545 = vrcp.f32 %v1059_v37 }
 0x14a   : > { %v3530_v59 = vpop.eup %3529  ;;  %v4361_v50 = vmul.f32 %v3528_v6, %v4255_v38  ;;  %3547 = vrcp.f32 %v1057_v43 }
 0x14b   : > { %v3532_v13 = vpop.eup %3531  ;;  %v4364_v51 = vmul.f32 %v3530_v59, %v4264_v9 }
 0x14c   : > { %v3534_v49 = vpop.eup %3533  ;;  %v4367_v40 = vmul.f32 %v3532_v13, %v4267_v0 }
 0x14d   : > { %v3536_v35 = vpop.eup %3535  ;;  %v1062_v42 = vadd.f32 1.0, %v3534_v49 }
 0x14e   : > { %v3538_v15 = vpop.eup %3537  ;;  %v1060_v38 = vadd.f32 1.0, %v3536_v35 }
 0x14f   : > { %v3540_v36 = vpop.eup %3539  ;;  %3549 = vrcp.f32 %v1062_v42  ;;  %v1063_v22 = vadd.f32 1.0, %v3538_v15 }
 0x150   : > { %3551 = vrcp.f32 %v1060_v38  ;;  %v1061_v9 = vadd.f32 1.0, %v3540_v36 }
 0x151   : > { %v3542_v58 = vpop.eup %3541  ;;  %3553 = vrcp.f32 %v1063_v22 }
 0x152   : > { %v3544_v32 = vpop.eup %3543  ;;  %v4374_v0 = vmul.f32 %v3542_v58, %v4278_v14  ;;  %3555 = vrcp.f32 %v1061_v9 }
 0x153   : > { %v3546_v21 = vpop.eup %3545  ;;  %v4377_v33 = vmul.f32 %v3544_v32, %v4284_v18 }
 0x154   : > { %4877 = vst [vmem:[#allocation6_spill] sm:$0xff] %v4374_v0  ;;  %v3548_v7 = vpop.eup %3547  ;;  %v4380_v37 = vmul.f32 %v3546_v21, %v4291_v23 }
 0x155   : > { %v4383_v41 = vmul.f32 %v3548_v7, %v4300_v12 }
 0x156   : > { %4878 = vst [vmem:[#allocation7_spill] sm:$0xff] %v4380_v37 }
 0x159   : > { %v3550_v14 = vpop.eup %3549 }
 0x15a   : > { %v3552_v59 = vpop.eup %3551  ;;  %v4390_v13 = vmul.f32 %v3550_v14, %v4313_v8  ;;  %v4408_v8 = vld [vmem:[%s4864_s9] sm:$0xff]  }
 0x15b   : > { %v3554_v18 = vpop.eup %3553  ;;  %v4393_v49 = vmul.f32 %v3552_v59, %v4319_v60  ;;  %3166 = vmatprep.subr.bf16.mxu1 %v4408_v8  ;;  %v4414_v60 = vld [vmem:[%s4863_s8] ss:$0 sm:$0xff] }
 0x15c   : > { %4879 = vst [vmem:[#allocation8_spill] sm:$0xff] %v4390_v13  ;;  %v3556_v23 = vpop.eup %3555  ;;  %v4396_v35 = vmul.f32 %v3554_v18, %v4326_v26 }
 0x15d   : > { %4880 = vst [vmem:[#allocation9_spill] sm:$0xff] %v4393_v49  ;;  %v4399_v12 = vmul.f32 %v3556_v23, %v4338_v16 }
 0x15e   : > { %4881 = vst [vmem:[#allocation10_spill] sm:$0xff] %v4396_v35 }
 0x15f   : > { %4882 = vst [vmem:[#allocation11_spill] sm:$0xff] %v4399_v12 }
 0x19e   : > { %v3100_v26 = vpop.f32.mrb[32].mxu0 }
 0x19f   : > { %v4417_v16 = vadd.f32 %v3100_v26, %v4414_v60  ;;  %v1704_v38 = vpop.f32.mrb[33].mxu0 }
 0x1a0   : > { %v4420_v36 = vadd.f32 %v4414_v60, %v1704_v38  ;;  %v3101_v22 = vpop.f32.mrb[34].mxu0 }
 0x1a1   : > { %v1833_v9 = vsub.f32 0.0, %v4417_v16  ;;  %v4424_v58 = vadd.f32 %v3101_v22, %v4414_v60  ;;  %v1707_v32 = vpop.f32.mrb[35].mxu0 }
 0x1a2   : > { %v1831_v21 = vsub.f32 0.0, %v4420_v36  ;;  %v4428_v7 = vadd.f32 %v4414_v60, %v1707_v32 }
 0x1a3   : > { %v1867_v14 = vmul.f32 1.442695, %v1833_v9  ;;  %v1834_v59 = vsub.f32 0.0, %v4424_v58 }
 0x1a4   : > { %v1863_v18 = vmul.f32 1.442695, %v1831_v21  ;;  %v1832_v23 = vsub.f32 0.0, %v4428_v7 }
 0x1a5   : > { %3557 = vpow2.f32 %v1867_v14  ;;  %v1869_v26 = vmul.f32 1.442695, %v1834_v59 }
 0x1a6   : > { %3559 = vpow2.f32 %v1863_v18  ;;  %v1865_v38 = vmul.f32 1.442695, %v1832_v23 }
 0x1a7   : > { %3561 = vpow2.f32 %v1869_v26  ;;  %v3104_v42 = vpop.f32.mrb[36].mxu0 }
 0x1a8   : > { %3563 = vpow2.f32 %v1865_v38  ;;  %v4433_v22 = vadd.f32 %v3104_v42, %v4414_v60  ;;  %v1720_v15 = vpop.f32.mrb[37].mxu0 }
 0x1a9   : > { %v4436_v32 = vadd.f32 %v4414_v60, %v1720_v15  ;;  %v3105_v9 = vpop.f32.mrb[38].mxu0 }
 0x1aa   : > { %v1837_v43 = vsub.f32 0.0, %v4433_v22  ;;  %v4440_v21 = vadd.f32 %v3105_v9, %v4414_v60  ;;  %v1723_v14 = vpop.f32.mrb[39].mxu0 }
 0x1ab   : > { %v1835_v59 = vsub.f32 0.0, %v4436_v32  ;;  %v4444_v18 = vadd.f32 %v4414_v60, %v1723_v14 }
 0x1ac   : > { %v1875_v23 = vmul.f32 1.442695, %v1837_v43  ;;  %v1838_v42 = vsub.f32 0.0, %v4440_v21 }
 0x1ad   : > { %v1871_v26 = vmul.f32 1.442695, %v1835_v59  ;;  %v1836_v38 = vsub.f32 0.0, %v4444_v18 }
 0x1ae   : > { %3565 = vpow2.f32 %v1875_v23  ;;  %v1877_v15 = vmul.f32 1.442695, %v1838_v42 }
 0x1af   : > { %v3558_v6 = vpop.eup %3557  ;;  %3567 = vpow2.f32 %v1871_v26  ;;  %v1873_v11 = vmul.f32 1.442695, %v1836_v38  ;;  %v3108_v27 = vpop.f32.mrb[40].mxu0 }
 0x1b0   : > { %v3560_v9 = vpop.eup %3559  ;;  %v1929_v28 = vadd.f32 1.0, %v3558_v6  ;;  %3569 = vpow2.f32 %v1877_v15  ;;  %v4449_v47 = vadd.f32 %v3108_v27, %v4414_v60  ;;  %v1736_v14 = vpop.f32.mrb[41].mxu0 }
 0x1b1   : > { %v3562_v54 = vpop.eup %3561  ;;  %v1927_v43 = vadd.f32 1.0, %v3560_v9  ;;  %3571 = vpow2.f32 %v1873_v11  ;;  %v4452_v59 = vadd.f32 %v4414_v60, %v1736_v14  ;;  %v3109_v55 = vpop.f32.mrb[42].mxu0 }
 0x1b2   : > { %v3564_v23 = vpop.eup %3563  ;;  %3573 = vrcp.f32 %v1929_v28  ;;  %v1930_v42 = vadd.f32 1.0, %v3562_v54  ;;  %v1841_v26 = vsub.f32 0.0, %v4449_v47  ;;  %v4456_v38 = vadd.f32 %v3109_v55, %v4414_v60  ;;  %v1739_v6 = vpop.f32.mrb[43].mxu0 }
 0x1b3   : > { %3575 = vrcp.f32 %v1927_v43  ;;  %v1928_v27 = vadd.f32 1.0, %v3564_v23  ;;  %v1839_v15 = vsub.f32 0.0, %v4452_v59  ;;  %v4460_v9 = vadd.f32 %v4414_v60, %v1739_v6 }
 0x1b4   : > { %3577 = vrcp.f32 %v1930_v42  ;;  %v1883_v11 = vmul.f32 1.442695, %v1841_v26  ;;  %v1842_v14 = vsub.f32 0.0, %v4456_v38 }
 0x1b5   : > { %3579 = vrcp.f32 %v1928_v27  ;;  %v1879_v28 = vmul.f32 1.442695, %v1839_v15  ;;  %v1840_v54 = vsub.f32 0.0, %v4460_v9 }
 0x1b6   : > { %3581 = vpow2.f32 %v1883_v11  ;;  %v1885_v2 = vmul.f32 1.442695, %v1842_v14 }
 0x1b7   : > { %3583 = vpow2.f32 %v1879_v28  ;;  %v1881_v55 = vmul.f32 1.442695, %v1840_v54  ;;  %v3112_v57 = vpop.f32.mrb[44].mxu0 }
 0x1b8   : > { %v3566_v43 = vpop.eup %3565  ;;  %3585 = vpow2.f32 %v1885_v2  ;;  %v4465_v23 = vadd.f32 %v3112_v57, %v4414_v60  ;;  %v1752_v6 = vpop.f32.mrb[45].mxu0 }
 0x1b9   : > { %v3568_v44 = vpop.eup %3567  ;;  %v1933_v42 = vadd.f32 1.0, %v3566_v43  ;;  %3587 = vpow2.f32 %v1881_v55  ;;  %v4468_v26 = vadd.f32 %v4414_v60, %v1752_v6  ;;  %v3113_v27 = vpop.f32.mrb[46].mxu0 }
 0x1ba   : > { %v3570_v15 = vpop.eup %3569  ;;  %v1931_v3 = vadd.f32 1.0, %v3568_v44  ;;  %v1845_v11 = vsub.f32 0.0, %v4465_v23  ;;  %v4472_v14 = vadd.f32 %v3113_v27, %v4414_v60  ;;  %v1755_v28 = vpop.f32.mrb[47].mxu0 }
 0x1bb   : > { %v3572_v2 = vpop.eup %3571  ;;  %3589 = vrcp.f32 %v1933_v42  ;;  %v1934_v57 = vadd.f32 1.0, %v3570_v15  ;;  %v1843_v54 = vsub.f32 0.0, %v4468_v26  ;;  %v4476_v43 = vadd.f32 %v4414_v60, %v1755_v28 }
 0x1bc   : > { %v3574_v55 = vpop.eup %3573  ;;  %3591 = vrcp.f32 %v1931_v3  ;;  %v1932_v6 = vadd.f32 1.0, %v3572_v2  ;;  %v1891_v1 = vmul.f32 1.442695, %v1845_v11  ;;  %v1846_v44 = vsub.f32 0.0, %v4472_v14 }
 0x1bd   : > { %v3576_v56 = vpop.eup %3575  ;;  %3593 = vrcp.f32 %v1934_v57  ;;  %v1887_v13 = vmul.f32 1.442695, %v1843_v54  ;;  %v1844_v27 = vsub.f32 0.0, %v4476_v43  ;;  %v1993_v49 = vmul.f32 %v3574_v55, %v4417_v16 }
 0x1be   : > { %v3578_v35 = vpop.eup %3577  ;;  %3595 = vrcp.f32 %v1932_v6  ;;  %v1893_v42 = vmul.f32 1.442695, %v1846_v44  ;;  %v1991_v11 = vmul.f32 %v3576_v56, %v4420_v36 }
 0x1bf   : > { %v3580_v15 = vpop.eup %3579  ;;  %v1994_v28 = vmul.f32 %v3578_v35, %v4424_v58  ;;  %3597 = vpow2.f32 %v1891_v1  ;;  %v1889_v12 = vmul.f32 1.442695, %v1844_v27 }
 0x1c0   : > { %v3582_v3 = vpop.eup %3581  ;;  %v1992_v2 = vmul.f32 %v3580_v15, %v4428_v7  ;;  %3599 = vpow2.f32 %v1887_v13  ;;  %v3116_v57 = vpop.f32.mrb[48].mxu0 }
 0x1c1   : > { %v3584_v54 = vpop.eup %3583  ;;  %v2042_v0 = vpack.c.bf16 %v1994_v28, %v1993_v49  ;;  %v1937_v37 = vadd.f32 1.0, %v3582_v3  ;;  %3601 = vpow2.f32 %v1893_v42  ;;  %v4485_v6 = vadd.f32 %v3116_v57, %v4414_v60  ;;  %v1768_v44 = vpop.f32.mrb[49].mxu0 }
 0x1c2   : > { %v3586_v16 = vpop.eup %3585  ;;  %v2041_v55 = vpack.c.bf16 %v1992_v2, %v1991_v11  ;;  %v1935_v35 = vadd.f32 1.0, %v3584_v54  ;;  %3603 = vpow2.f32 %v1889_v12  ;;  %v4488_v1 = vadd.f32 %v4414_v60, %v1768_v44  ;;  %v3117_v56 = vpop.f32.mrb[50].mxu0 }
 0x1c3   : > { %v3588_v36 = vpop.eup %3587  ;;  %3605 = vrcp.f32 %v1937_v37  ;;  %v1938_v13 = vadd.f32 1.0, %v3586_v16  ;;  %v1849_v58 = vsub.f32 0.0, %v4485_v6  ;;  %v4492_v49 = vadd.f32 %v3117_v56, %v4414_v60  ;;  %v1771_v7 = vpop.f32.mrb[51].mxu0 }
 0x1c4   : > { %3607 = vrcp.f32 %v1935_v35  ;;  %v1936_v27 = vadd.f32 1.0, %v3588_v36  ;;  %v1847_v42 = vsub.f32 0.0, %v4488_v1  ;;  %v4496_v15 = vadd.f32 %v4414_v60, %v1771_v7  ;;  %3134 = vmatprep.mubr.msk.bf16.mxu1 %vm726_vm1, %v2041_v55 }
 0x1c5   : > { %v3590_v12 = vpop.eup %3589  ;;  %3609 = vrcp.f32 %v1938_v13  ;;  %v1899_v28 = vmul.f32 1.442695, %v1849_v58  ;;  %v1850_v37 = vsub.f32 0.0, %v4492_v49  ;;  %3135 = vmatmul.mubr.msk.bf16.vlgmr.msra.gmra.mrb[4].mxu1 %vm726_vm1, %v2042_v0 }
 0x1c6   : > { %v3592_v3 = vpop.eup %3591  ;;  %3611 = vrcp.f32 %v1936_v27  ;;  %v1895_v11 = vmul.f32 1.442695, %v1847_v42  ;;  %v1848_v2 = vsub.f32 0.0, %v4496_v15  ;;  %3167 = vmatpush3.bf16.msra.mxu1 %v4408_v8  ;;  %v1997_v16 = vmul.f32 %v3590_v12, %v4433_v22 }
 0x1c7   : > { %v3594_v57 = vpop.eup %3593  ;;  %3613 = vpow2.f32 %v1899_v28  ;;  %v1901_v54 = vmul.f32 1.442695, %v1850_v37  ;;  %v1995_v0 = vmul.f32 %v3592_v3, %v4436_v32 }
 0x1c8   : > { %v3596_v44 = vpop.eup %3595  ;;  %v1998_v55 = vmul.f32 %v3594_v57, %v4440_v21  ;;  %3615 = vpow2.f32 %v1895_v11  ;;  %v1897_v35 = vmul.f32 1.442695, %v1848_v2 }
 0x1c9   : > { %v3598_v56 = vpop.eup %3597  ;;  %v1996_v36 = vmul.f32 %v3596_v44, %v4444_v18  ;;  %3617 = vpow2.f32 %v1901_v54  ;;  %v3120_v13 = vpop.f32.mrb[52].mxu0 }
 0x1ca   : > { %v3600_v58 = vpop.eup %3599  ;;  %v2044_v7 = vpack.c.bf16 %v1998_v55, %v1997_v16  ;;  %v1941_v8 = vadd.f32 1.0, %v3598_v56  ;;  %3619 = vpow2.f32 %v1897_v35  ;;  %v4508_v27 = vadd.f32 %v3120_v13, %v4414_v60  ;;  %v1784_v42 = vpop.f32.mrb[53].mxu0 }
 0x1cb   : > { %v3602_v22 = vpop.eup %3601  ;;  %v2043_v12 = vpack.c.bf16 %v1996_v36, %v1995_v0  ;;  %v1939_v21 = vadd.f32 1.0, %v3600_v58  ;;  %v4511_v28 = vadd.f32 %v4414_v60, %v1784_v42  ;;  %v3121_v37 = vpop.f32.mrb[54].mxu0 }
 0x1cc   : > { %v3604_v32 = vpop.eup %3603  ;;  %3621 = vrcp.f32 %v1941_v8  ;;  %v1942_v18 = vadd.f32 1.0, %v3602_v22  ;;  %v1853_v3 = vsub.f32 0.0, %v4508_v27  ;;  %v4515_v11 = vadd.f32 %v3121_v37, %v4414_v60  ;;  %v1787_v2 = vpop.f32.mrb[55].mxu0 }
 0x1cd   : > { %v3606_v57 = vpop.eup %3605  ;;  %3623 = vrcp.f32 %v1939_v21  ;;  %v1940_v54 = vadd.f32 1.0, %v3604_v32  ;;  %v1851_v44 = vsub.f32 0.0, %v4511_v28  ;;  %v4519_v16 = vadd.f32 %v4414_v60, %v1787_v2  ;;  %3138 = vmatprep.mubr.msk.bf16.mxu1 %vm726_vm1, %v2043_v12 }
 0x1ce   : > { %v3608_v55 = vpop.eup %3607  ;;  %3625 = vrcp.f32 %v1942_v18  ;;  %v1907_v35 = vmul.f32 1.442695, %v1853_v3  ;;  %v1854_v56 = vsub.f32 0.0, %v4515_v11  ;;  %3139 = vmatmul.mubr.msk.bf16.gmra.mrb[8].mxu1 %vm726_vm1, %v2044_v7  ;;  %v2001_v8 = vmul.f32 %v3606_v57, %v4449_v47 }
 0x1cf   : > { %v3610_v0 = vpop.eup %3609  ;;  %3627 = vrcp.f32 %v1940_v54  ;;  %v1903_v36 = vmul.f32 1.442695, %v1851_v44  ;;  %v1852_v13 = vsub.f32 0.0, %v4519_v16  ;;  %v1999_v21 = vmul.f32 %v3608_v55, %v4452_v59 }
 0x1d0   : > { %v3612_v58 = vpop.eup %3611  ;;  %v2002_v42 = vmul.f32 %v3610_v0, %v4456_v38  ;;  %3629 = vpow2.f32 %v1907_v35  ;;  %v1909_v22 = vmul.f32 1.442695, %v1854_v56 }
 0x1d1   : > { %v3614_v12 = vpop.eup %3613  ;;  %v2000_v37 = vmul.f32 %v3612_v58, %v4460_v9  ;;  %3631 = vpow2.f32 %v1903_v36  ;;  %v1905_v32 = vmul.f32 1.442695, %v1852_v13  ;;  %v3124_v7 = vpop.f32.mrb[56].mxu0 }
 0x1d2   : > { %v3616_v18 = vpop.eup %3615  ;;  %v2046_v3 = vpack.c.bf16 %v2002_v42, %v2001_v8  ;;  %v1945_v2 = vadd.f32 1.0, %v3614_v12  ;;  %3633 = vpow2.f32 %v1909_v22  ;;  %v4530_v54 = vadd.f32 %v3124_v7, %v4414_v60  ;;  %v1800_v47 = vpop.f32.mrb[57].mxu0 }
 0x1d3   : > { %v3618_v57 = vpop.eup %3617  ;;  %v2045_v38 = vpack.c.bf16 %v2000_v37, %v1999_v21  ;;  %v1943_v44 = vadd.f32 1.0, %v3616_v18  ;;  %3635 = vpow2.f32 %v1905_v32  ;;  %v4533_v35 = vadd.f32 %v4414_v60, %v1800_v47  ;;  %v3125_v59 = vpop.f32.mrb[58].mxu0 }
 0x1d4   : > { %v3620_v9 = vpop.eup %3619  ;;  %3637 = vrcp.f32 %v1945_v2  ;;  %v1946_v55 = vadd.f32 1.0, %v3618_v57  ;;  %v1857_v56 = vsub.f32 0.0, %v4530_v54  ;;  %v4537_v0 = vadd.f32 %v3125_v59, %v4414_v60  ;;  %v1803_v36 = vpop.f32.mrb[59].mxu0 }
 0x1d5   : > { %3639 = vrcp.f32 %v1943_v44  ;;  %v1944_v13 = vadd.f32 1.0, %v3620_v9  ;;  %v1855_v58 = vsub.f32 0.0, %v4533_v35  ;;  %v4541_v8 = vadd.f32 %v4414_v60, %v1803_v36  ;;  %3142 = vmatprep.mubr.msk.bf16.mxu1 %vm726_vm1, %v2045_v38 }
 0x1d6   : > { %v3622_v42 = vpop.eup %3621  ;;  %3641 = vrcp.f32 %v1946_v55  ;;  %v1915_v22 = vmul.f32 1.442695, %v1857_v56  ;;  %v1858_v12 = vsub.f32 0.0, %v4537_v0  ;;  %3143 = vmatmul.mubr.msk.bf16.gmra.mrb[12].mxu1 %vm726_vm1, %v2046_v3 }
 0x1d7   : > { %v3624_v21 = vpop.eup %3623  ;;  %3643 = vrcp.f32 %v1944_v13  ;;  %v1911_v37 = vmul.f32 1.442695, %v1855_v58  ;;  %v1856_v32 = vsub.f32 0.0, %v4541_v8  ;;  %v2005_v47 = vmul.f32 %v3622_v42, %v4465_v23 }
 0x1d8   : > { %v3626_v7 = vpop.eup %3625  ;;  %3645 = vpow2.f32 %v1915_v22  ;;  %v1917_v18 = vmul.f32 1.442695, %v1858_v12  ;;  %v2003_v59 = vmul.f32 %v3624_v21, %v4468_v26 }
 0x1d9   : > { %v3628_v2 = vpop.eup %3627  ;;  %v2006_v57 = vmul.f32 %v3626_v7, %v4472_v14  ;;  %3647 = vpow2.f32 %v1911_v37  ;;  %v1913_v38 = vmul.f32 1.442695, %v1856_v32 }
 0x1da   : > { %v3630_v44 = vpop.eup %3629  ;;  %v2004_v3 = vmul.f32 %v3628_v2, %v4476_v43  ;;  %3649 = vpow2.f32 %v1917_v18  ;;  %v3128_v9 = vpop.f32.mrb[0].mxu1 }
 0x1db   : > { %v3632_v55 = vpop.eup %3631  ;;  %v2048_v56 = vpack.c.bf16 %v2006_v57, %v2005_v47  ;;  %v1949_v36 = vadd.f32 1.0, %v3630_v44  ;;  %3651 = vpow2.f32 %v1913_v38  ;;  %v4552_v13 = vadd.f32 %v3128_v9, %v4414_v60  ;;  %v1816_v58 = vpop.f32.mrb[1].mxu1 }
 0x1dc   : > { %v3634_v23 = vpop.eup %3633  ;;  %v2047_v42 = vpack.c.bf16 %v2004_v3, %v2003_v59  ;;  %v1947_v14 = vadd.f32 1.0, %v3632_v55  ;;  %v4555_v22 = vadd.f32 %v4414_v60, %v1816_v58  ;;  %v3129_v12 = vpop.f32.mrb[2].mxu1 }
 0x1dd   : > { %v3636_v26 = vpop.eup %3635  ;;  %3653 = vrcp.f32 %v1949_v36  ;;  %v1950_v43 = vadd.f32 1.0, %v3634_v23  ;;  %v1861_v21 = vsub.f32 0.0, %v4552_v13  ;;  %v4559_v37 = vadd.f32 %v3129_v12, %v4414_v60  ;;  %v1819_v32 = vpop.f32.mrb[3].mxu1 }
 0x1de   : > { %v3638_v7 = vpop.eup %3637  ;;  %3655 = vrcp.f32 %v1947_v14  ;;  %v1948_v18 = vadd.f32 1.0, %v3636_v26  ;;  %v1859_v2 = vsub.f32 0.0, %v4555_v22  ;;  %v4563_v47 = vadd.f32 %v4414_v60, %v1819_v32  ;;  %3146 = vmatprep.mubr.msk.bf16.mxu1 %vm726_vm1, %v2047_v42 }
 0x1df   : > { %v3640_v57 = vpop.eup %3639  ;;  %3657 = vrcp.f32 %v1950_v43  ;;  %v1923_v38 = vmul.f32 1.442695, %v1861_v21  ;;  %v1862_v44 = vsub.f32 0.0, %v4559_v37  ;;  %3147 = vmatmul.mubr.msk.bf16.gmra.mrb[16].mxu1 %vm726_vm1, %v2048_v56  ;;  %v2009_v36 = vmul.f32 %v3638_v7, %v4485_v6 }
 0x1e0   : > { %v3642_v59 = vpop.eup %3641  ;;  %3659 = vrcp.f32 %v1948_v18  ;;  %v1919_v3 = vmul.f32 1.442695, %v1859_v2  ;;  %v1860_v9 = vsub.f32 0.0, %v4563_v47  ;;  %v2007_v42 = vmul.f32 %v3640_v57, %v4488_v1 }
 0x1e1   : > { %v3644_v55 = vpop.eup %3643  ;;  %v2010_v60 = vmul.f32 %v3642_v59, %v4492_v49  ;;  %3661 = vpow2.f32 %v1923_v38  ;;  %v1925_v58 = vmul.f32 1.442695, %v1862_v44 }
 0x1e2   : > { %v3646_v23 = vpop.eup %3645  ;;  %v2008_v14 = vmul.f32 %v3644_v55, %v4496_v15  ;;  %3663 = vpow2.f32 %v1919_v3  ;;  %v1921_v12 = vmul.f32 1.442695, %v1860_v9 }
 0x1e3   : > { %v3648_v56 = vpop.eup %3647  ;;  %v2050_v26 = vpack.c.bf16 %v2010_v60, %v2009_v36  ;;  %v1953_v43 = vadd.f32 1.0, %v3646_v23  ;;  %3665 = vpow2.f32 %v1925_v58 }
 0x1e4   : > { %v3650_v21 = vpop.eup %3649  ;;  %v2049_v32 = vpack.c.bf16 %v2008_v14, %v2007_v42  ;;  %v1951_v18 = vadd.f32 1.0, %v3648_v56  ;;  %3667 = vpow2.f32 %v1921_v12 }
 0x1e5   : > { %v3652_v6 = vpop.eup %3651  ;;  %3669 = vrcp.f32 %v1953_v43  ;;  %v1954_v49 = vadd.f32 1.0, %v3650_v21 }
 0x1e6   : > { %3671 = vrcp.f32 %v1951_v18  ;;  %v1952_v7 = vadd.f32 1.0, %v3652_v6  ;;  %3150 = vmatprep.mubr.msk.bf16.mxu1 %vm726_vm1, %v2049_v32 }
 0x1e7   : > { %v3654_v1 = vpop.eup %3653  ;;  %3673 = vrcp.f32 %v1954_v49  ;;  %3151 = vmatmul.mubr.msk.bf16.gmra.mrb[20].mxu1 %vm726_vm1, %v2050_v26 }
 0x1e8   : > { %v3656_v15 = vpop.eup %3655  ;;  %3675 = vrcp.f32 %v1952_v7  ;;  %v2013_v38 = vmul.f32 %v3654_v1, %v4508_v27 }
 0x1e9   : > { %v3658_v2 = vpop.eup %3657  ;;  %v2011_v3 = vmul.f32 %v3656_v15, %v4511_v28 }
 0x1ea   : > { %v3660_v57 = vpop.eup %3659  ;;  %v2014_v44 = vmul.f32 %v3658_v2, %v4515_v11 }
 0x1eb   : > { %v3662_v59 = vpop.eup %3661  ;;  %v2012_v9 = vmul.f32 %v3660_v57, %v4519_v16 }
 0x1ec   : > { %v3664_v55 = vpop.eup %3663  ;;  %v2052_v36 = vpack.c.bf16 %v2014_v44, %v2013_v38  ;;  %v1957_v60 = vadd.f32 1.0, %v3662_v59  ;;  %v4883_v38 = vpack.c.bf16 %v4220_v61, %v4211_v48  ;;  %v4887_v48 = vpack.c.bf16 %v4287_v25, %v4275_v10  ;;  %v4896_v10 = vld [vmem:[#allocation7_spill] sm:$0xff] }
 0x1ed   : > { %v3666_v58 = vpop.eup %3665  ;;  %v2051_v23 = vpack.c.bf16 %v2012_v9, %v2011_v3  ;;  %v1955_v42 = vadd.f32 1.0, %v3664_v55  ;;  %v4890_v61 = vpack.c.bf16 %v4316_v17, %v4303_v63  ;;  %v4899_v63 = vld [vmem:[#allocation11_spill] sm:$0xff] }
 0x1ee   : > { %v3668_v14 = vpop.eup %3667  ;;  %3677 = vrcp.f32 %v1957_v60  ;;  %v1958_v12 = vadd.f32 1.0, %v3666_v58 }
 0x1ef   : > { %v3670_v56 = vpop.eup %3669  ;;  %3679 = vrcp.f32 %v1955_v42  ;;  %v1956_v26 = vadd.f32 1.0, %v3668_v14  ;;  %3154 = vmatprep.mubr.msk.bf16.mxu1 %vm726_vm1, %v2051_v23 }
 0x1f0   : > { %v3672_v27 = vpop.eup %3671  ;;  %3681 = vrcp.f32 %v1958_v12  ;;  %3155 = vmatmul.mubr.msk.bf16.gmra.mrb[24].mxu1 %vm726_vm1, %v2052_v36  ;;  %v2017_v16 = vmul.f32 %v3670_v56, %v4530_v54 }
 0x1f1   : > { %v3674_v28 = vpop.eup %3673  ;;  %3683 = vrcp.f32 %v1956_v26  ;;  %v2015_v21 = vmul.f32 %v3672_v27, %v4533_v35 }
 0x1f2   : > { %v3676_v11 = vpop.eup %3675  ;;  %v2018_v43 = vmul.f32 %v3674_v28, %v4537_v0 }
 0x1f3   : > { %v2016_v32 = vmul.f32 %v3676_v11, %v4541_v8 }
 0x1f4   : > { %v2054_v18 = vpack.c.bf16 %v2018_v43, %v2017_v16 }
 0x1f5   : > { %v2053_v6 = vpack.c.bf16 %v2016_v32, %v2015_v21  ;;  %v4713_v32 = vstv %s2910_s29 }
 0x1f7   : > { %3158 = vmatprep.mubr.msk.bf16.mxu1 %vm726_vm1, %v2053_v6 }
 0x1f8   : > { %v3678_v49 = vpop.eup %3677  ;;  %3159 = vmatmul.mubr.msk.bf16.gmra.mrb[28].mxu1 %vm726_vm1, %v2054_v18 }
 0x1f9   : > { %v3680_v7 = vpop.eup %3679  ;;  %v2021_v2 = vmul.f32 %v3678_v49, %v4552_v13  ;;  %v4884_v13 = vpack.c.bf16 %v4214_v52, %v4208_v24  ;;  %v4888_v24 = vpack.c.bf16 %v4281_v53, %v4271_v5  ;;  %v4889_v52 = vpack.c.bf16 %v4322_v46, %v4310_v4  ;;  %v4897_v53 = vld [vmem:[#allocation6_spill] sm:$0xff]  ;;  %v4900_v4 = vld [vmem:[#allocation9_spill] sm:$0xff] }
 0x1fa   : > { %v3682_v1 = vpop.eup %3681  ;;  %v2019_v0 = vmul.f32 %v3680_v7, %v4555_v22  ;;  %v4885_v22 = vpack.c.bf16 %v4252_v34, %v4243_v39  ;;  %v4892_v39 = vpack.c.bf16 %v4348_v62, %v4341_v30  ;;  %v4894_v34 = vpack.c.bf16 %v4364_v51, %v4358_v45  ;;  %v4902_v46 = vld [vmem:[#allocation10_spill] sm:$0xff]  ;;  %v4903_v30 = vld [vmem:[#allocation8_spill] sm:$0xff] }
 0x1fb   : > { %v3684_v15 = vpop.eup %3683  ;;  %v2022_v54 = vmul.f32 %v3682_v1, %v4559_v37  ;;  %v4886_v37 = vpack.c.bf16 %v4246_v29, %v4239_v19  ;;  %v4891_v19 = vpack.c.bf16 %v4351_v31, %v4345_v20  ;;  %v4893_v29 = vpack.c.bf16 %v4367_v40, %v4361_v50  ;;  %v2630_v50 = vld [vmem:[%s570_s27] sm:$0x3] }
 0x1fc   : > { %v2020_v35 = vmul.f32 %v3684_v15, %v4563_v47  ;;  %v4895_v5 = vpack.c.bf16 %v4383_v41, %v4377_v33  ;;  %v4898_v25 = vpack.c.bf16 %v4896_v10, %v4897_v53  ;;  %v4901_v17 = vpack.c.bf16 %v4899_v63, %v4900_v4 }
 0x1fd   : > { %v2056_v57 = vpack.c.bf16 %v2022_v54, %v2021_v2  ;;  %v4904_v20 = vpack.c.bf16 %v4902_v46, %v4903_v30  ;;  %v2499_v62 = vlaneseq  ;;  %v3727_v41 = vmov 1.0|1.0  }
 0x1fe   : > { %v2055_v8 = vpack.c.bf16 %v2020_v35, %v2019_v0 }
 0x1ff   : > { %v4657_v31 = vshrl.u32 %v2499_v62, 7 }
 0x200   : > { %3162 = vmatprep.mubr.msk.bf16.mxu1 %vm726_vm1, %v2055_v8 }
 0x201   : > { %3163 = vmatmul.mubr.msk.bf16.gmra.mrb[32].mxu1 %vm726_vm1, %v2056_v57  ;;  %v2637_v45 = vsub.s32 1, %v4657_v31  ;;  %v2633_v51 = vsub.s32 0, %v4657_v31  ;;  %v2516_v16 = vadd.s32 128, %v4657_v31  ;;  %v2517_v21 = vadd.s32 136, %v4657_v31 }
 0x202   : > { %3168 = vmatprep.mubr.msk.bf16.mxu1 %vm1621_vm2, %v4883_v38  ;;  %v2501_v6 = vadd.s32 8, %v4657_v31  ;;  %v2518_v7 = vadd.s32 144, %v4657_v31  ;;  %v2519_v1 = vadd.s32 152, %v4657_v31  ;;  %v2534_v57 = vadd.s32 %v4713_v32, %v4657_v31 }
 0x203   : > { %v2638_v40 = vrot.slane %v2630_v50, %v2637_v45  ;;  %v4666_v33 = vrot.slane %v2630_v50, %v2633_v51  ;;  %v2550_v54 = vadd.s32 %v4713_v32, %v2516_v16  ;;  %v2551_v35 = vadd.s32 %v4713_v32, %v2517_v21 }
 0x204   : > { %v2535_v8 = vadd.s32 %v4713_v32, %v2501_v6  ;;  %v2502_v38 = vadd.s32 16, %v4657_v31  ;;  %vm2566_vm8 = vcmp.lt.s32.totalorder %v2534_v57, 600  ;;  %v2522_v10 = vadd.s32 176, %v4657_v31 }
 0x205   : > { %vm2640_vm3 = vcmp.eq.s32.totalorder %v4657_v31, %v2638_v40  ;;  %vm2639_vm5 = vcmp.eq.s32.totalorder %v4657_v31, %v4666_v33  ;;  %vm2582_vm6 = vcmp.lt.s32.totalorder %v2550_v54, 600  ;;  %vm2583_vm7 = vcmp.lt.s32.totalorder %v2551_v35, 600 }
 0x206   : > { %vm2961_vm4 = vmpackc.low %vm2640_vm3, %vm2640_vm3  ;;  %vm2567_vm9 = vcmp.lt.s32.totalorder %v2535_v8, 600  ;;  %v2523_v53 = vadd.s32 184, %v4657_v31  ;;  %v2506_v62 = vadd.s32 48, %v4657_v31  ;;  %v2507_v45 = vadd.s32 56, %v4657_v31 }
 0x207   : > { %2962 = vmatprep.mubr.msk.bf16.mxu0 %vm2961_vm4, %v3727_v41  ;;  %vm2937_vm12 = vmpackc.low %vm2583_vm7, %vm2582_vm6  ;;  %v2556_v50 = vadd.s32 %v4713_v32, %v2522_v10  ;;  %v2524_v40 = vadd.s32 192, %v4657_v31  ;;  %v2525_v6 = vadd.s32 200, %v4657_v31  ;;  %v2526_v35 = vadd.s32 208, %v4657_v31 }
 0x208   : > { %vm2913_vm13 = vmpackc.low %vm2567_vm9, %vm2566_vm8  ;;  %v2557_v51 = vadd.s32 %v4713_v32, %v2523_v53  ;;  %v2527_v57 = vadd.s32 216, %v4657_v31  ;;  %v2530_v53 = vadd.s32 240, %v4657_v31 }
 0x209   : > { %3169 = vmatmul.mubr.msk.bf16.vlgmr.msra.gmra.mrb[4].mxu1 %vm1621_vm2, %v4884_v13  ;;  %v2503_v13 = vadd.s32 24, %v4657_v31  ;;  %vm2588_vm7 = vcmp.lt.s32.totalorder %v2556_v50, 600 }
 0x20a   : > { %3172 = vmatprep.mubr.msk.bf16.mxu1 %vm1621_vm2, %v4885_v22  ;;  %v2552_v22 = vadd.s32 %v4713_v32, %v2518_v7  ;;  %vm2589_vm8 = vcmp.lt.s32.totalorder %v2557_v51, 600 }
 0x20c   : > { %vm2584_vm10 = vcmp.lt.s32.totalorder %v2552_v22, 600  ;;  %v2510_v22 = vadd.s32 80, %v4657_v31 }
 0x211   : > { %3173 = vmatmul.mubr.msk.bf16.gmra.mrb[8].mxu1 %vm1621_vm2, %v4886_v37  ;;  %v2553_v37 = vadd.s32 %v4713_v32, %v2519_v1  ;;  %v2540_v1 = vadd.s32 %v4713_v32, %v2506_v62  ;;  %v2564_v62 = vadd.s32 %v4713_v32, %v2530_v53 }
 0x212   : > { %3176 = vmatprep.mubr.msk.bf16.mxu1 %vm1621_vm2, %v4887_v48  ;;  %v2520_v48 = vadd.s32 160, %v4657_v31 }
 0x213   : > { %vm2585_vm11 = vcmp.lt.s32.totalorder %v2553_v37, 600 }
 0x214   : > { %v2554_v4 = vadd.s32 %v4713_v32, %v2520_v48  ;;  %vm2940_vm14 = vmpackc.low %vm2585_vm11, %vm2584_vm10  ;;  %v2559_v48 = vadd.s32 %v4713_v32, %v2525_v6 }
 0x215   : > { %vm2946_vm11 = vmpackc.low %vm2589_vm8, %vm2588_vm7 }
 0x216   : > { %vm2586_vm1 = vcmp.lt.s32.totalorder %v2554_v4, 600 }
 0x219   : > { %3177 = vmatmul.mubr.msk.bf16.gmra.mrb[12].mxu1 %vm1621_vm2, %v4888_v24 }
 0x21a   : > { %3180 = vmatprep.mubr.msk.bf16.mxu1 %vm1621_vm2, %v4889_v52  ;;  %v2521_v52 = vadd.s32 168, %v4657_v31 }
 0x21c   : > { %v2555_v46 = vadd.s32 %v4713_v32, %v2521_v52  ;;  %v2561_v52 = vadd.s32 %v4713_v32, %v2527_v57 }
 0x21e   : > { %vm2587_vm3 = vcmp.lt.s32.totalorder %v2555_v46, 600 }
 0x21f   : > { %vm2943_vm9 = vmpackc.low %vm2587_vm3, %vm2586_vm1 }
 0x221   : > { %3181 = vmatmul.mubr.msk.bf16.gmra.mrb[16].mxu1 %vm1621_vm2, %v4890_v61  ;;  %v2504_v61 = vadd.s32 32, %v4657_v31 }
 0x222   : > { %3184 = vmatprep.mubr.msk.bf16.mxu1 %vm1621_vm2, %v4891_v19  ;;  %v2505_v19 = vadd.s32 40, %v4657_v31 }
 0x223   : > { %v2538_v30 = vadd.s32 %v4713_v32, %v2504_v61  ;;  %v2544_v61 = vadd.s32 %v4713_v32, %v2510_v22 }
 0x225   : > { %vm2570_vm4 = vcmp.lt.s32.totalorder %v2538_v30, 600  ;;  %vm2576_vm7 = vcmp.lt.s32.totalorder %v2544_v61, 600 }
 0x229   : > { %3185 = vmatmul.mubr.msk.bf16.gmra.mrb[20].mxu1 %vm1621_vm2, %v4892_v39 }
 0x22a   : > { %3188 = vmatprep.mubr.msk.bf16.mxu1 %vm1621_vm2, %v4893_v29  ;;  %v2536_v29 = vadd.s32 %v4713_v32, %v2502_v38 }
 0x22c   : > { %vm2568_vm15 = vcmp.lt.s32.totalorder %v2536_v29, 600 }
 0x231   : > { %3189 = vmatmul.mubr.msk.bf16.gmra.mrb[24].mxu1 %vm1621_vm2, %v4894_v34  ;;  %v2537_v34 = vadd.s32 %v4713_v32, %v2503_v13  ;;  %v2558_v13 = vadd.s32 %v4713_v32, %v2524_v40 }
 0x232   : > { %3192 = vmatprep.mubr.msk.bf16.mxu1 %vm1621_vm2, %v4895_v5 }
 0x233   : > { %vm2569_vm0 = vcmp.lt.s32.totalorder %v2537_v34, 600  ;;  %v2528_v34 = vadd.s32 224, %v4657_v31 }
 0x235   : > { %v2562_v46 = vadd.s32 %v4713_v32, %v2528_v34 }
 0x239   : > { %3193 = vmatmul.mubr.msk.bf16.gmra.mrb[28].mxu1 %vm1621_vm2, %v4898_v25 }
 0x23a   : > { %3196 = vmatprep.mubr.msk.bf16.mxu1 %vm1621_vm2, %v4901_v17 }
 0x241   : > { %3197 = vmatmul.mubr.msk.bf16.gmra.mrb[32].mxu1 %vm1621_vm2, %v4904_v20  ;;  %v2539_v20 = vadd.s32 %v4713_v32, %v2505_v19  ;;  %vm4759_vm2 = vmpackc.low %vm2569_vm0, %vm2568_vm15  ;;  %vm2591_vm0 = vcmp.lt.s32.totalorder %v2559_v48, 600 }
 0x243   : > { %vm2571_vm6 = vcmp.lt.s32.totalorder %v2539_v20, 600 }
 0x244   : > { %vm2919_vm10 = vmpackc.low %vm2571_vm6, %vm2570_vm4  ;;  %vm2593_vm4 = vcmp.lt.s32.totalorder %v2561_v52, 600 }
 0x2dc   : > { %v4672_v47 = vpop.f32.mrb[4].mxu1 }
 0x2dd   : > { %v4674_v44 = vpop.f32.mrb[5].mxu1 }
 0x2de   : > { %v4676_v59 = vpop.f32.mrb[6].mxu1 }
 0x2df   : > { %v2917_v3 = vpack.c.bf16 %v4676_v59, %v4672_v47  ;;  %v4680_v9 = vpop.f32.mrb[7].mxu1 }
 0x2e0   : > { %v2914_v55 = vpack.c.bf16 %v4680_v9, %v4674_v44  ;;  %v2541_v44 = vadd.s32 %v4713_v32, %v2507_v45  ;;  %v2508_v9 = vadd.s32 64, %v4657_v31 }
 0x2e2   : > { %v2542_v47 = vadd.s32 %v4713_v32, %v2508_v9 }
 0x2e4   : > { %v4684_v36 = vpop.f32.mrb[8].mxu1  ;;  %vm2574_vm1 = vcmp.lt.s32.totalorder %v2542_v47, 600 }
 0x2e5   : > { %v4686_v60 = vpop.f32.mrb[9].mxu1 }
 0x2e6   : > { %v4688_v58 = vpop.f32.mrb[10].mxu1 }
 0x2e7   : > { %v2923_v23 = vpack.c.bf16 %v4688_v58, %v4684_v36  ;;  %v4692_v42 = vpop.f32.mrb[11].mxu1  ;;  %v2514_v58 = vadd.s32 112, %v4657_v31 }
 0x2e8   : > { %v2920_v14 = vpack.c.bf16 %v4692_v42, %v4686_v60  ;;  %v2512_v60 = vadd.s32 96, %v4657_v31  ;;  %v2513_v42 = vadd.s32 104, %v4657_v31 }
 0x2e9   : > { %v2548_v40 = vadd.s32 %v4713_v32, %v2514_v58 }
 0x2ea   : > { %v2546_v20 = vadd.s32 %v4713_v32, %v2512_v60  ;;  %v2547_v36 = vadd.s32 %v4713_v32, %v2513_v42 }
 0x2ec   : > { %v4696_v12 = vpop.f32.mrb[12].mxu1 }
 0x2ed   : > { %v4698_v56 = vpop.f32.mrb[13].mxu1 }
 0x2ee   : > { %v4700_v26 = vpop.f32.mrb[14].mxu1 }
 0x2ef   : > { %v2929_v27 = vpack.c.bf16 %v4700_v26, %v4696_v12  ;;  %v4704_v28 = vpop.f32.mrb[15].mxu1  ;;  %v2647_v26 = vld [vmem:[#allocation2] sm:$0xf] }
 0x2f0   : > { %v2926_v11 = vpack.c.bf16 %v4704_v28, %v4698_v56 }
 0x2f4   : > { %v4710_v43 = vpop.f32.mrb[16].mxu1 }
 0x2f5   : > { %v4715_v18 = vpop.f32.mrb[17].mxu1 }
 0x2f6   : > { %v4718_v49 = vpop.f32.mrb[18].mxu1 }
 0x2f7   : > { %v2935_v15 = vpack.c.bf16 %v4718_v49, %v4710_v43  ;;  %v4724_v2 = vpop.f32.mrb[19].mxu1 }
 0x2f8   : > { %v2932_v0 = vpack.c.bf16 %v4724_v2, %v4715_v18 }
 0x2fc   : > { %v3186_v24 = vpop.f32.mrb[20].mxu1 }
 0x2fd   : > { %v2434_v39 = vpop.f32.mrb[21].mxu1 }
 0x2fe   : > { %v3187_v5 = vpop.f32.mrb[22].mxu1 }
 0x2ff   : > { %v2941_v25 = vpack.c.bf16 %v3187_v5, %v3186_v24  ;;  %v2437_v63 = vpop.f32.mrb[23].mxu1  ;;  %v2511_v24 = vadd.s32 88, %v4657_v31  ;;  %v2529_v5 = vadd.s32 232, %v4657_v31 }
 0x300   : > { %v2938_v17 = vpack.c.bf16 %v2437_v63, %v2434_v39 }
 0x301   : > { %v2545_v29 = vadd.s32 %v4713_v32, %v2511_v24  ;;  %v2563_v30 = vadd.s32 %v4713_v32, %v2529_v5 }
 0x302   : > { %3038 = vmatprep.subr.msk.bf16.mxu0 %vm2937_vm12, %v2938_v17  ;;  %vm2572_vm12 = vcmp.lt.s32.totalorder %v2540_v1, 600 }
 0x303   : > { %3039 = vmatpush3.bf16.msk.msra.mxu0 %vm2913_vm13, %v2914_v55  ;;  %v2509_v55 = vadd.s32 72, %v4657_v31  ;;  %vm2573_vm13 = vcmp.lt.s32.totalorder %v2541_v44, 600 }
 0x304   : > { %v3190_v16 = vpop.f32.mrb[24].mxu1  ;;  %3040 = vmatprep.subr.msk.bf16.mxu0 %vm2940_vm14, %v2941_v25  ;;  %vm2590_vm14 = vcmp.lt.s32.totalorder %v2558_v13, 600  ;;  %vm4791_vm15 = vmpackc.low %vm2573_vm13, %vm2572_vm12  ;;  %v2531_v25 = vadd.s32 248, %v4657_v31  ;;  %vm2594_vm12 = vcmp.lt.s32.totalorder %v2562_v46, 600  ;;  %vm2595_vm13 = vcmp.lt.s32.totalorder %v2563_v30, 600 }
 0x305   : > { %v2450_v7 = vpop.f32.mrb[25].mxu1  ;;  %v2543_v59 = vadd.s32 %v4713_v32, %v2509_v55  ;;  %vm2949_vm6 = vmpackc.low %vm2591_vm0, %vm2590_vm14  ;;  %vm2578_vm14 = vcmp.lt.s32.totalorder %v2546_v20, 600  ;;  %vm2596_vm0 = vcmp.lt.s32.totalorder %v2564_v62, 600 }
 0x306   : > { %v3191_v54 = vpop.f32.mrb[26].mxu1  ;;  %v2565_v45 = vadd.s32 %v4713_v32, %v2531_v25 }
 0x307   : > { %v2947_v8 = vpack.c.bf16 %v3191_v54, %v3190_v16  ;;  %v2453_v38 = vpop.f32.mrb[27].mxu1  ;;  %3041 = vmatpush3.bf16.msk.msra.mxu0 %vm4759_vm2, %v2917_v3  ;;  %v2560_v3 = vadd.s32 %v4713_v32, %v2526_v35  ;;  %vm2575_vm2 = vcmp.lt.s32.totalorder %v2543_v59, 600 }
 0x308   : > { %v2944_v37 = vpack.c.bf16 %v2453_v38, %v2450_v7  ;;  %vm2925_vm8 = vmpackc.low %vm2575_vm2, %vm2574_vm1  ;;  %vm2597_vm1 = vcmp.lt.s32.totalorder %v2565_v45, 600 }
 0x309   : > { %vm2592_vm3 = vcmp.lt.s32.totalorder %v2560_v3, 600  ;;  %vm2955_vm2 = vmpackc.low %vm2595_vm13, %vm2594_vm12 }
 0x30a   : > { %3042 = vmatprep.subr.msk.bf16.mxu0 %vm2943_vm9, %v2944_v37  ;;  %vm2577_vm9 = vcmp.lt.s32.totalorder %v2545_v29, 600 }
 0x30b   : > { %3043 = vmatpush3.bf16.msk.msra.mxu0 %vm2919_vm10, %v2920_v14  ;;  %vm2952_vm10 = vmpackc.low %vm2593_vm4, %vm2592_vm3 }
 0x30c   : > { %v3194_v19 = vpop.f32.mrb[28].mxu1  ;;  %3044 = vmatprep.subr.msk.bf16.mxu0 %vm2946_vm11, %v2947_v8  ;;  %vm2928_vm11 = vmpackc.low %vm2577_vm9, %vm2576_vm7 }
 0x30d   : > { %v2466_v10 = vpop.f32.mrb[29].mxu1  ;;  %vm2958_vm4 = vmpackc.low %vm2597_vm1, %vm2596_vm0 }
 0x30e   : > { %v3195_v14 = vpop.f32.mrb[30].mxu1  ;;  %vm2963_vm9 = vmpackc.low %vm2639_vm5, %vm2639_vm5 }
 0x30f   : > { %v2953_v63 = vpack.c.bf16 %v3195_v14, %v3194_v19  ;;  %v2469_v4 = vpop.f32.mrb[31].mxu1  ;;  %3045 = vmatpush3.bf16.msk.msra.mxu0 %vm4791_vm15, %v2923_v23  ;;  %v2515_v23 = vadd.s32 120, %v4657_v31  ;;  %vm2579_vm15 = vcmp.lt.s32.totalorder %v2547_v36, 600 }
 0x310   : > { %v2950_v17 = vpack.c.bf16 %v2469_v4, %v2466_v10  ;;  %vm2931_vm3 = vmpackc.low %vm2579_vm15, %vm2578_vm14 }
 0x311   : > { %v2549_v16 = vadd.s32 %v4713_v32, %v2515_v23 }
 0x312   : > { %3046 = vmatprep.subr.msk.bf16.mxu0 %vm2949_vm6, %v2950_v17  ;;  %vm2580_vm6 = vcmp.lt.s32.totalorder %v2548_v40, 600 }
 0x313   : > { %3047 = vmatpush3.bf16.msk.msra.mxu0 %vm2925_vm8, %v2926_v11  ;;  %vm2581_vm7 = vcmp.lt.s32.totalorder %v2549_v16, 600 }
 0x314   : > { %v3198_v50 = vpop.f32.mrb[32].mxu1  ;;  %3048 = vmatprep.subr.msk.bf16.mxu0 %vm2952_vm10, %v2953_v63  ;;  %vm2934_vm8 = vmpackc.low %vm2581_vm7, %vm2580_vm6  ;;  %vm2705_vm10 = vcmask 3072  }
 0x315   : > { %v2482_v51 = vpop.f32.mrb[33].mxu1 }
 0x316   : > { %v3199_v21 = vpop.f32.mrb[34].mxu1 }
 0x317   : > { %v2959_v6 = vpack.c.bf16 %v3199_v21, %v3198_v50  ;;  %v2485_v7 = vpop.f32.mrb[35].mxu1  ;;  %3049 = vmatpush3.bf16.msk.msra.mxu0 %vm2928_vm11, %v2929_v27 }
 0x318   : > { %v2956_v56 = vpack.c.bf16 %v2485_v7, %v2482_v51 }
 0x31a   : > { %3050 = vmatprep.subr.msk.bf16.mxu0 %vm2955_vm2, %v2956_v56 }
 0x31b   : > { %3051 = vmatpush3.bf16.msk.msra.mxu0 %vm2931_vm3, %v2932_v0 }
 0x31c   : > { %3052 = vmatprep.subr.msk.bf16.mxu0 %vm2958_vm4, %v2959_v6 }
 0x31f   : > { %3053 = vmatpush3.bf16.msk.msra.mxu0 %vm2934_vm8, %v2935_v15 }
 0x322   : > { %2964 = vmatmul.mubr.msk.bf16.vlgmr.msra.gmra.mrb[60].mxu0 %vm2963_vm9, %v3727_v41 }
 0x3f5   : > { %v3054_v12 = vpop.f32.mrb[60].mxu0  ;;  %2710 = sbr.rel (%p2965_p10) target bundleno = 1028 (0x404), region = 72 }
 0x3f6   : > { %v3055_v27 = vpop.f32.mrb[61].mxu0 }
 0x3f7   : > { %v3056_v28 = vadd.f32 %v3055_v27, %v3054_v12  ;;  %v3057_v11 = vpop.f32.mrb[62].mxu0 }
 0x3f8   : > { %v3058_v32 = vpop.f32.mrb[63].mxu0 }
 0x3f9   : > { %v2704_v18 = vadd.f32 %v3056_v28, %v2647_v26 }
 0x3fb   : > { %2706 = vst.msk [vmem:[#allocation2] sm:$0xf] %vm2705_vm10, %v2704_v18 }
 0x402   : > { %v2711_v43 = vld [vmem:[#allocation2] sm:$0xf] }
 0x403   : > { %2712 = vst.msk [vmem:[%s3828_s13] sm:$0xf] %vm2705_vm10, %v2711_v43 }
 0x404 PF: > { %s21_s21 = sadd.s32 1, %s3723_s21   ;;  %s4909_s18 = sld [smem:[#allocation3_spill]] }
 0x405   : > { %p18_p11 = scmp.ge.s32.totalorder %s21_s21, 6   ;;  %s4910_s25 = sld [smem:[#allocation4_spill]] }
 0x406   : > { %s4911_s20 = sld [smem:[#allocation5_spill]]  ;;  %s4912_s17 = smov %s3715_s19 }
 0x407   :  { %20 = sbr.rel (!%p18_p11) target bundleno = 3 (0x3), region = 108 }
 0x40b   : > { %s4913_s19 = smov %s4910_s25 }

</bundles_post_ra>
